<compile_context>
chip_gen: v7x
topology: tpu7x:2x2x1
jax: 0.10.0
libtpu: 0.0.40
codegen_flags: <defaults>
</compile_context>

<pallas_src>
import numpy as np
import jax
import jax.numpy as jnp
from jax.experimental import pallas as pl
from jax.experimental.pallas import tpu as pltpu

NDF = 8
C1 = NDF * 2            # 16 channels after the first conv of branch 1/2
C2 = NDF * 4            # 32 channels after the second conv / conv4 first conv
L_IN = 110
BN_EPS = 1e-5
LRELU_SLOPE = 0.2

# (kernel, stride, T_out) of the first Conv1d in each branch
K1A, S1A, T1 = 30, 5, 17
K2A, S2A, T2 = 25, 5, 18
K4A, S4A, T4 = 15, 4, 13
K1B, K2B, K4B = 17, 18, 10          # second convs (collapse length to 1)

NCOL12 = T1 * C1 + T2 * C1          # 272 + 288 = 560  (fused branch-1/2 slab)
NCOL4 = T4 * C2                     # 416              (conv4 slab)


def _lrelu(v):
    return jnp.where(v > 0, v, LRELU_SLOPE * v)


# -----------------------------------------------------------------------------
# The single fused kernel
# -----------------------------------------------------------------------------
def _discriminator_kernel(
        xz_ref,
        w12_ref, g12_ref, bt12_ref, invn12_ref, sel12_ref, selt12_ref,
        w12b_ref, b12b_ref,
        w4_ref, g4_ref, bt4_ref, sel4_ref, selt4_ref, w4b_ref, b4b_ref,
        o_ref):
    f32 = jnp.float32

    def bn_scale_shift(h, sel, selt, gamma, beta, invn):
        """Train-mode BN folded into a per-slab-column scale/shift.
        h: (B, T*C) slab, column j = t*C + c.  sel (T*C, Cbn) / selt (Cbn, T*C)
        are 0/1 selector matrices grouping columns by BN channel."""
        colsum = jnp.sum(h, axis=0, keepdims=True)                 # (1, T*C)
        colsq = jnp.sum(h * h, axis=0, keepdims=True)              # (1, T*C)
        tot = jnp.dot(colsum, sel, preferred_element_type=f32)     # (1, Cbn)
        totsq = jnp.dot(colsq, sel, preferred_element_type=f32)    # (1, Cbn)
        mean = tot * invn
        # single-pass biased variance; clamp guards rsqrt against tiny
        # negative values from cancellation (see review correctness note).
        var = jnp.maximum(totsq * invn - mean * mean, 0.0)
        scale = gamma * jax.lax.rsqrt(var + BN_EPS)                # EUP rsqrt
        shift = beta - mean * scale
        # broadcast per-channel scale/shift to the slab columns (MXU, no tile op)
        scale_slab = jnp.dot(scale, selt, preferred_element_type=f32)
        shift_slab = jnp.dot(shift, selt, preferred_element_type=f32)
        return scale_slab, shift_slab

    # ---- branch 1 + branch 2 first convs: ONE Toeplitz matmul on [x | z]
    xz = xz_ref[...]                                               # (B, 220)
    h12 = jnp.dot(xz, w12_ref[...], preferred_element_type=f32)   # (B, 560)
    # (first-conv biases dropped: cancelled by the BN mean subtraction)

    # ---- train-mode BN (per-branch channels via selector) + LeakyReLU
    sc12, sh12 = bn_scale_shift(h12, sel12_ref[...], selt12_ref[...],
                                g12_ref[...], bt12_ref[...], invn12_ref[...])
    act12 = _lrelu(h12 * sc12 + sh12)                              # (B, 560)

    # ---- both length-collapsing second convs as one block-diagonal matmul;
    #      result columns are already [outx | outz] == torch.cat(..., dim=1)
    cat = _lrelu(jnp.dot(act12, w12b_ref[...], preferred_element_type=f32)
                 + b12b_ref[...])                                  # (B, 64)

    # ---- conv4: Toeplitz first conv -> BN -> LReLU -> collapsing conv -> sigmoid
    h4 = jnp.dot(cat, w4_ref[...], preferred_element_type=f32)    # (B, 416)
    inv_n4 = 1.0 / float(h4.shape[0] * T4)                        # static
    sc4, sh4 = bn_scale_shift(h4, sel4_ref[...], selt4_ref[...],
                              g4_ref[...], bt4_ref[...], inv_n4)
    act4 = _lrelu(h4 * sc4 + sh4)                                  # (B, 416)
    logit = jnp.dot(act4, w4b_ref[...], preferred_element_type=f32) \
        + b4b_ref[...]                                             # (B, 1)
    # Exact reciprocal kept: approx=True (EUP vrcp) saves nothing measurable on
    # a (B,1) tensor but its ~2^-12 relative error would eat the 1e-4 parity
    # budget vs the nn.BatchNorm1d/PyTorch reference.
    o_ref[...] = pl.reciprocal(1.0 + jnp.exp(-logit), approx=False)


# -----------------------------------------------------------------------------
# Wrapper: one pallas_call, everything in VMEM, only (B, 1) written to HBM
# -----------------------------------------------------------------------------
def _vmem_spec():
    return pl.BlockSpec(memory_space=pltpu.MemorySpace.VMEM)


_ARG_ORDER = ("w12", "g12", "bt12", "sel12", "selT12", "w12b", "b12b",
              "w4", "g4", "bt4", "sel4", "selT4", "w4b", "b4b")


@jax.jit
def discriminator_forward(x, z, m):
    b = x.shape[0]
    # host-side concat so both branches' first convs are a single MXU matmul
    xz = jnp.concatenate([x, z], axis=1)                           # (B, 220)
    # per-BN-channel 1/N (branch 1 averages over B*T1, branch 2 over B*T2)
    invn12 = jnp.concatenate(
        [jnp.full((1, C1), 1.0 / (b * T1), jnp.float32),
         jnp.full((1, C1), 1.0 / (b * T2), jnp.float32)], axis=1)   # (1, 32)

    args = (xz, m["w12"], m["g12"], m["bt12"], invn12, m["sel12"], m["selT12"],
            m["w12b"], m["b12b"],
            m["w4"], m["g4"], m["bt4"], m["sel4"], m["selT4"],
            m["w4b"], m["b4b"])

    flops = 2 * b * (2 * L_IN * NCOL12 + NCOL12 * 2 * C2
                     + 2 * C2 * NCOL4 + NCOL4) \
        + 4 * (NCOL12 * 2 * C1 + NCOL4 * C2)            # stats/broadcast matmuls
    bytes_accessed = sum(int(a.size) * 4 for a in args) + b * 4

    # TODO(synk): for large B, add a B-blocked grid (BlockSpec((TB, 220), ...),
    # dimension_semantics=("parallel",)) to use both v7x TensorCores and stay
    # under the 16/32 MiB default scoped-VMEM limits on v5e/v6e — but that makes
    # train-mode BN stats per-block; a two-pass stats scheme would be needed to
    # keep exact nn.BatchNorm1d semantics.
    return pl.pallas_call(
        _discriminator_kernel,
        out_shape=jax.ShapeDtypeStruct((b, 1), jnp.float32),
        in_specs=[_vmem_spec() for _ in args],
        out_specs=_vmem_spec(),
        cost_estimate=pl.CostEstimate(flops=flops, transcendentals=2 * b + 64,
                                      bytes_accessed=bytes_accessed),
    )(*args)


# -----------------------------------------------------------------------------
# Parameter construction (synthetic, PyTorch layout)
# -----------------------------------------------------------------------------
def init_params(key):
    ndf = NDF
    shapes = {
        # conv1: Conv1d(1,16,30,5) + BN(16) ; Conv1d(16,32,17,5)
        "w1a": (ndf * 2, 1, K1A), "b1a": (ndf * 2,), "g1": (ndf * 2,), "bt1": (ndf * 2,),
        "w1b": (ndf * 4, ndf * 2, K1B), "b1b": (ndf * 4,),
        # conv2: Conv1d(1,16,25,5) + BN(16) ; Conv1d(16,32,18,4)
        "w2a": (ndf * 2, 1, K2A), "b2a": (ndf * 2,), "g2": (ndf * 2,), "bt2": (ndf * 2,),
        "w2b": (ndf * 4, ndf * 2, K2B), "b2b": (ndf * 4,),
        # conv4: Conv1d(1,32,15,4) + BN(32) ; Conv1d(32,1,10,4)
        "w4a": (ndf * 4, 1, K4A), "b4a": (ndf * 4,), "g4": (ndf * 4,), "bt4": (ndf * 4,),
        "w4b": (1, ndf * 4, K4B), "b4b": (1,),
    }
    names = sorted(shapes)
    keys = jax.random.split(key, len(names))
    p = {}
    for name, k in zip(names, keys):
        if name.startswith("g"):          # BN gamma ~ 1
            p[name] = 1.0 + 0.1 * jax.random.normal(k, shapes[name], jnp.float32)
        else:
            p[name] = 0.1 * jax.random.normal(k, shapes[name], jnp.float32)
    return p


def prep_matrices(p):
    """Repack PyTorch-layout weights into the dense Toeplitz / block-diagonal /
    selector matrices the fused kernel consumes (slab column j = t*C + c)."""
    pn = {k: np.asarray(v, np.float32) for k, v in p.items()}
    eye1 = np.eye(C1, dtype=np.float32)
    eye2 = np.eye(C2, dtype=np.float32)

    # --- fused branch-1/2 first convs: Toeplitz weight on [x | z] (220, 560)
    w12 = np.zeros((2 * L_IN, NCOL12), np.float32)
    w1a = pn["w1a"][:, 0, :].T                       # (30, 16)
    w2a = pn["w2a"][:, 0, :].T                       # (25, 16)
    off = T1 * C1                                    # 272: branch-2 column offset
    for t in range(T1):
        w12[S1A * t:S1A * t + K1A, t * C1:(t + 1) * C1] = w1a
    for t in range(T2):
        w12[L_IN + S2A * t:L_IN + S2A * t + K2A,
            off + t * C1:off + (t + 1) * C1] = w2a

    # --- BN selector: slab column -> BN channel (branch1: 0..15, branch2: 16..31)
    sel12 = np.zeros((NCOL12, 2 * C1), np.float32)
    sel12[:off, :C1] = np.tile(eye1, (T1, 1))
    sel12[off:, C1:] = np.tile(eye1, (T2, 1))

    # --- block-diagonal second convs -> (B, 64) = [outx | outz]
    w12b = np.zeros((NCOL12, 2 * C2), np.float32)
    w12b[:off, :C2] = np.transpose(pn["w1b"], (2, 1, 0)).reshape(K1B * C1, C2)
    w12b[off:, C2:] = np.transpose(pn["w2b"], (2, 1, 0)).reshape(K2B * C1, C2)
    b12b = np.concatenate([pn["b1b"], pn["b2b"]])[None, :]          # (1, 64)

    # --- conv4 first conv Toeplitz (64, 416)
    w4 = np.zeros((2 * C2, NCOL4), np.float32)
    w4a = pn["w4a"][:, 0, :].T                       # (15, 32)
    for t in range(T4):
        w4[S4A * t:S4A * t + K4A, t * C2:(t + 1) * C2] = w4a
    sel4 = np.tile(eye2, (T4, 1))                    # (416, 32)

    # --- conv4 second conv: zero rows for timesteps the size-10 kernel skips
    w4b = np.zeros((NCOL4, 1), np.float32)
    w4b[:K4B * C2, :] = np.transpose(pn["w4b"], (2, 1, 0)).reshape(K4B * C2, 1)
    b4b = pn["b4b"][None, :]                         # (1, 1)

    j = jnp.asarray
    return {
        "w12": j(w12),
        "g12": j(np.concatenate([pn["g1"], pn["g2"]])[None, :]),
        "bt12": j(np.concatenate([pn["bt1"], pn["bt2"]])[None, :]),
        "sel12": j(sel12), "selT12": j(np.ascontiguousarray(sel12.T)),
        "w12b": j(w12b), "b12b": j(b12b),
        "w4": j(w4),
        "g4": j(pn["g4"][None, :]), "bt4": j(pn["bt4"][None, :]),
        "sel4": j(sel4), "selT4": j(np.ascontiguousarray(sel4.T)),
        "w4b": j(w4b), "b4b": j(b4b),
    }


# -----------------------------------------------------------------------------
# Pure-JAX reference (lax.conv) for a correctness cross-check
# -----------------------------------------------------------------------------
def _conv1d(x, w, b, stride):
    out = jax.lax.conv_general_dilated(
        x, w, window_strides=(stride,), padding="VALID",
        dimension_numbers=("NCH", "OIH", "NCH"))
    return out + b[None, :, None]


def _bn_train(x, gamma, beta):
    mean = jnp.mean(x, axis=(0, 2), keepdims=True)
    var = jnp.mean(jnp.square(x - mean), axis=(0, 2), keepdims=True)
    xn = (x - mean) * jax.lax.rsqrt(var + BN_EPS)
    return xn * gamma[None, :, None] + beta[None, :, None]


@jax.jit
def discriminator_reference(x, z, p):
    xb, zb = x[:, None, :], z[:, None, :]
    h = _lrelu(_bn_train(_conv1d(xb, p["w1a"], p["b1a"], S1A), p["g1"], p["bt1"]))
    outx = _lrelu(_conv1d(h, p["w1b"], p["b1b"], 5))[:, :, 0]
    h = _lrelu(_bn_train(_conv1d(zb, p["w2a"], p["b2a"], S2A), p["g2"], p["bt2"]))
    outz = _lrelu(_conv1d(h, p["w2b"], p["b2b"], 4))[:, :, 0]
    cat = jnp.concatenate([outx, outz], axis=1)[:, None, :]
    h = _lrelu(_bn_train(_conv1d(cat, p["w4a"], p["b4a"], S4A), p["g4"], p["bt4"]))
    out = jax.nn.sigmoid(_conv1d(h, p["w4b"], p["b4b"], 4))[:, :, 0]
    return out


# -----------------------------------------------------------------------------
# Main
# -----------------------------------------------------------------------------
if __name__ == "__main__":
    key = jax.random.PRNGKey(0)
    k_x, k_z, k_p = jax.random.split(key, 3)

    B = 2
    x = jax.random.normal(k_x, (B, L_IN), jnp.float32)
    z = jax.random.normal(k_z, (B, L_IN), jnp.float32)

    params = init_params(k_p)
    mats = prep_matrices(params)

    out = jax.block_until_ready(discriminator_forward(x, z, mats))

    assert out.shape == (B, 1), out.shape
    assert bool(jnp.all(jnp.isfinite(out)))
    assert bool(jnp.all((out >= 0.0) & (out <= 1.0)))      # sigmoid output range

    ref = jax.block_until_ready(discriminator_reference(x, z, params))
    max_err = float(jnp.max(jnp.abs(out - ref)))
    assert max_err < 1e-4, f"mismatch vs plain-JAX reference: {max_err}"

    print("KERNEL_OK")
</pallas_src>

<mosaic_0001>
module attributes {stable_mosaic.version = 11 : i64} {
  func.func @_discriminator_kernel(%arg0: memref<2x220xf32, #tpu.memory_space<vmem>>, %arg1: memref<220x560xf32, #tpu.memory_space<vmem>>, %arg2: memref<1x32xf32, #tpu.memory_space<vmem>>, %arg3: memref<1x32xf32, #tpu.memory_space<vmem>>, %arg4: memref<1x32xf32, #tpu.memory_space<vmem>>, %arg5: memref<560x32xf32, #tpu.memory_space<vmem>>, %arg6: memref<32x560xf32, #tpu.memory_space<vmem>>, %arg7: memref<560x64xf32, #tpu.memory_space<vmem>>, %arg8: memref<1x64xf32, #tpu.memory_space<vmem>>, %arg9: memref<64x416xf32, #tpu.memory_space<vmem>>, %arg10: memref<1x32xf32, #tpu.memory_space<vmem>>, %arg11: memref<1x32xf32, #tpu.memory_space<vmem>>, %arg12: memref<416x32xf32, #tpu.memory_space<vmem>>, %arg13: memref<32x416xf32, #tpu.memory_space<vmem>>, %arg14: memref<416x1xf32, #tpu.memory_space<vmem>>, %arg15: memref<1x1xf32, #tpu.memory_space<vmem>>, %arg16: memref<2x1xf32, #tpu.memory_space<vmem>>) attributes {dimension_semantics = [], scalar_prefetch = 0 : i64, scratch_operands = 0 : i64, tpu.core_type = #tpu.core_type<tc>} {
    %c0 = arith.constant 0 : index
    %c0_0 = arith.constant 0 : index
    %0 = vector.load %arg0[%c0, %c0_0] : memref<2x220xf32, #tpu.memory_space<vmem>>, vector<2x220xf32>
    %c0_1 = arith.constant 0 : index
    %c0_2 = arith.constant 0 : index
    %1 = vector.load %arg1[%c0_1, %c0_2] : memref<220x560xf32, #tpu.memory_space<vmem>>, vector<220x560xf32>
    %cst = arith.constant dense<0.000000e+00> : vector<2x560xf32>
    %2 = tpu.matmul %0, %1, %cst {dimension_numbers = #tpu.dot_dimension_numbers<[1], [0], [0], [1], [0, 0, 1, 1], [], []>} : vector<2x220xf32>, vector<220x560xf32>, vector<2x560xf32> -> vector<2x560xf32>
    %c0_3 = arith.constant 0 : index
    %c0_4 = arith.constant 0 : index
    %3 = vector.load %arg5[%c0_3, %c0_4] : memref<560x32xf32, #tpu.memory_space<vmem>>, vector<560x32xf32>
    %c0_5 = arith.constant 0 : index
    %c0_6 = arith.constant 0 : index
    %4 = vector.load %arg6[%c0_5, %c0_6] : memref<32x560xf32, #tpu.memory_space<vmem>>, vector<32x560xf32>
    %c0_7 = arith.constant 0 : index
    %c0_8 = arith.constant 0 : index
    %5 = vector.load %arg2[%c0_7, %c0_8] : memref<1x32xf32, #tpu.memory_space<vmem>>, vector<1x32xf32>
    %c0_9 = arith.constant 0 : index
    %c0_10 = arith.constant 0 : index
    %6 = vector.load %arg3[%c0_9, %c0_10] : memref<1x32xf32, #tpu.memory_space<vmem>>, vector<1x32xf32>
    %c0_11 = arith.constant 0 : index
    %c0_12 = arith.constant 0 : index
    %7 = vector.load %arg4[%c0_11, %c0_12] : memref<1x32xf32, #tpu.memory_space<vmem>>, vector<1x32xf32>
    %cst_13 = arith.constant dense<0.000000e+00> : vector<560xf32>
    %8 = vector.multi_reduction <add>, %2, %cst_13 [0] : vector<2x560xf32> to vector<560xf32>
    %9 = vector.shape_cast %8 : vector<560xf32> to vector<1x560xf32>
    %10 = arith.mulf %2, %2 : vector<2x560xf32>
    %cst_14 = arith.constant dense<0.000000e+00> : vector<560xf32>
    %11 = vector.multi_reduction <add>, %10, %cst_14 [0] : vector<2x560xf32> to vector<560xf32>
    %12 = vector.shape_cast %11 : vector<560xf32> to vector<1x560xf32>
    %cst_15 = arith.constant dense<0.000000e+00> : vector<1x32xf32>
    %13 = tpu.matmul %9, %3, %cst_15 {dimension_numbers = #tpu.dot_dimension_numbers<[1], [0], [0], [1], [0, 0, 1, 1], [], []>} : vector<1x560xf32>, vector<560x32xf32>, vector<1x32xf32> -> vector<1x32xf32>
    %cst_16 = arith.constant dense<0.000000e+00> : vector<1x32xf32>
    %14 = tpu.matmul %12, %3, %cst_16 {dimension_numbers = #tpu.dot_dimension_numbers<[1], [0], [0], [1], [0, 0, 1, 1], [], []>} : vector<1x560xf32>, vector<560x32xf32>, vector<1x32xf32> -> vector<1x32xf32>
    %15 = arith.mulf %13, %7 : vector<1x32xf32>
    %16 = arith.mulf %14, %7 : vector<1x32xf32>
    %17 = arith.mulf %15, %15 : vector<1x32xf32>
    %18 = arith.subf %16, %17 : vector<1x32xf32>
    %cst_17 = arith.constant 0.000000e+00 : f32
    %19 = vector.broadcast %cst_17 : f32 to vector<1x32xf32>
    %20 = arith.maximumf %18, %19 : vector<1x32xf32>
    %cst_18 = arith.constant 9.99999974E-6 : f32
    %21 = vector.broadcast %cst_18 : f32 to vector<1x32xf32>
    %22 = arith.addf %20, %21 : vector<1x32xf32>
    %23 = math.rsqrt %22 : vector<1x32xf32>
    %24 = arith.mulf %5, %23 : vector<1x32xf32>
    %25 = arith.mulf %15, %24 : vector<1x32xf32>
    %26 = arith.subf %6, %25 : vector<1x32xf32>
    %cst_19 = arith.constant dense<0.000000e+00> : vector<1x560xf32>
    %27 = tpu.matmul %24, %4, %cst_19 {dimension_numbers = #tpu.dot_dimension_numbers<[1], [0], [0], [1], [0, 0, 1, 1], [], []>} : vector<1x32xf32>, vector<32x560xf32>, vector<1x560xf32> -> vector<1x560xf32>
    %cst_20 = arith.constant dense<0.000000e+00> : vector<1x560xf32>
    %28 = tpu.matmul %26, %4, %cst_20 {dimension_numbers = #tpu.dot_dimension_numbers<[1], [0], [0], [1], [0, 0, 1, 1], [], []>} : vector<1x32xf32>, vector<32x560xf32>, vector<1x560xf32> -> vector<1x560xf32>
    %29 = vector.broadcast %27 : vector<1x560xf32> to vector<2x560xf32>
    %30 = arith.mulf %2, %29 : vector<2x560xf32>
    %31 = vector.broadcast %28 : vector<1x560xf32> to vector<2x560xf32>
    %32 = arith.addf %30, %31 : vector<2x560xf32>
    %cst_21 = arith.constant 0.000000e+00 : f32
    %33 = vector.broadcast %cst_21 : f32 to vector<2x560xf32>
    %34 = arith.cmpf ogt, %32, %33 : vector<2x560xf32>
    %cst_22 = arith.constant 2.000000e-01 : f32
    %35 = vector.broadcast %cst_22 : f32 to vector<2x560xf32>
    %36 = arith.mulf %35, %32 : vector<2x560xf32>
    %37 = arith.select %34, %32, %36 : vector<2x560xi1>, vector<2x560xf32>
    %c0_23 = arith.constant 0 : index
    %c0_24 = arith.constant 0 : index
    %38 = vector.load %arg7[%c0_23, %c0_24] : memref<560x64xf32, #tpu.memory_space<vmem>>, vector<560x64xf32>
    %cst_25 = arith.constant dense<0.000000e+00> : vector<2x64xf32>
    %39 = tpu.matmul %37, %38, %cst_25 {dimension_numbers = #tpu.dot_dimension_numbers<[1], [0], [0], [1], [0, 0, 1, 1], [], []>} : vector<2x560xf32>, vector<560x64xf32>, vector<2x64xf32> -> vector<2x64xf32>
    %c0_26 = arith.constant 0 : index
    %c0_27 = arith.constant 0 : index
    %40 = vector.load %arg8[%c0_26, %c0_27] : memref<1x64xf32, #tpu.memory_space<vmem>>, vector<1x64xf32>
    %41 = vector.broadcast %40 : vector<1x64xf32> to vector<2x64xf32>
    %42 = arith.addf %39, %41 : vector<2x64xf32>
    %cst_28 = arith.constant 0.000000e+00 : f32
    %43 = vector.broadcast %cst_28 : f32 to vector<2x64xf32>
    %44 = arith.cmpf ogt, %42, %43 : vector<2x64xf32>
    %cst_29 = arith.constant 2.000000e-01 : f32
    %45 = vector.broadcast %cst_29 : f32 to vector<2x64xf32>
    %46 = arith.mulf %45, %42 : vector<2x64xf32>
    %47 = arith.select %44, %42, %46 : vector<2x64xi1>, vector<2x64xf32>
    %c0_30 = arith.constant 0 : index
    %c0_31 = arith.constant 0 : index
    %48 = vector.load %arg9[%c0_30, %c0_31] : memref<64x416xf32, #tpu.memory_space<vmem>>, vector<64x416xf32>
    %cst_32 = arith.constant dense<0.000000e+00> : vector<2x416xf32>
    %49 = tpu.matmul %47, %48, %cst_32 {dimension_numbers = #tpu.dot_dimension_numbers<[1], [0], [0], [1], [0, 0, 1, 1], [], []>} : vector<2x64xf32>, vector<64x416xf32>, vector<2x416xf32> -> vector<2x416xf32>
    %c0_33 = arith.constant 0 : index
    %c0_34 = arith.constant 0 : index
    %50 = vector.load %arg12[%c0_33, %c0_34] : memref<416x32xf32, #tpu.memory_space<vmem>>, vector<416x32xf32>
    %c0_35 = arith.constant 0 : index
    %c0_36 = arith.constant 0 : index
    %51 = vector.load %arg13[%c0_35, %c0_36] : memref<32x416xf32, #tpu.memory_space<vmem>>, vector<32x416xf32>
    %c0_37 = arith.constant 0 : index
    %c0_38 = arith.constant 0 : index
    %52 = vector.load %arg10[%c0_37, %c0_38] : memref<1x32xf32, #tpu.memory_space<vmem>>, vector<1x32xf32>
    %c0_39 = arith.constant 0 : index
    %c0_40 = arith.constant 0 : index
    %53 = vector.load %arg11[%c0_39, %c0_40] : memref<1x32xf32, #tpu.memory_space<vmem>>, vector<1x32xf32>
    %cst_41 = arith.constant dense<0.000000e+00> : vector<416xf32>
    %54 = vector.multi_reduction <add>, %49, %cst_41 [0] : vector<2x416xf32> to vector<416xf32>
    %55 = vector.shape_cast %54 : vector<416xf32> to vector<1x416xf32>
    %56 = arith.mulf %49, %49 : vector<2x416xf32>
    %cst_42 = arith.constant dense<0.000000e+00> : vector<416xf32>
    %57 = vector.multi_reduction <add>, %56, %cst_42 [0] : vector<2x416xf32> to vector<416xf32>
    %58 = vector.shape_cast %57 : vector<416xf32> to vector<1x416xf32>
    %cst_43 = arith.constant dense<0.000000e+00> : vector<1x32xf32>
    %59 = tpu.matmul %55, %50, %cst_43 {dimension_numbers = #tpu.dot_dimension_numbers<[1], [0], [0], [1], [0, 0, 1, 1], [], []>} : vector<1x416xf32>, vector<416x32xf32>, vector<1x32xf32> -> vector<1x32xf32>
    %cst_44 = arith.constant dense<0.000000e+00> : vector<1x32xf32>
    %60 = tpu.matmul %58, %50, %cst_44 {dimension_numbers = #tpu.dot_dimension_numbers<[1], [0], [0], [1], [0, 0, 1, 1], [], []>} : vector<1x416xf32>, vector<416x32xf32>, vector<1x32xf32> -> vector<1x32xf32>
    %cst_45 = arith.constant 0.0384615399 : f32
    %61 = vector.broadcast %cst_45 : f32 to vector<1x32xf32>
    %62 = arith.mulf %59, %61 : vector<1x32xf32>
    %cst_46 = arith.constant 0.0384615399 : f32
    %63 = vector.broadcast %cst_46 : f32 to vector<1x32xf32>
    %64 = arith.mulf %60, %63 : vector<1x32xf32>
    %65 = arith.mulf %62, %62 : vector<1x32xf32>
    %66 = arith.subf %64, %65 : vector<1x32xf32>
    %cst_47 = arith.constant 0.000000e+00 : f32
    %67 = vector.broadcast %cst_47 : f32 to vector<1x32xf32>
    %68 = arith.maximumf %66, %67 : vector<1x32xf32>
    %cst_48 = arith.constant 9.99999974E-6 : f32
    %69 = vector.broadcast %cst_48 : f32 to vector<1x32xf32>
    %70 = arith.addf %68, %69 : vector<1x32xf32>
    %71 = math.rsqrt %70 : vector<1x32xf32>
    %72 = arith.mulf %52, %71 : vector<1x32xf32>
    %73 = arith.mulf %62, %72 : vector<1x32xf32>
    %74 = arith.subf %53, %73 : vector<1x32xf32>
    %cst_49 = arith.constant dense<0.000000e+00> : vector<1x416xf32>
    %75 = tpu.matmul %72, %51, %cst_49 {dimension_numbers = #tpu.dot_dimension_numbers<[1], [0], [0], [1], [0, 0, 1, 1], [], []>} : vector<1x32xf32>, vector<32x416xf32>, vector<1x416xf32> -> vector<1x416xf32>
    %cst_50 = arith.constant dense<0.000000e+00> : vector<1x416xf32>
    %76 = tpu.matmul %74, %51, %cst_50 {dimension_numbers = #tpu.dot_dimension_numbers<[1], [0], [0], [1], [0, 0, 1, 1], [], []>} : vector<1x32xf32>, vector<32x416xf32>, vector<1x416xf32> -> vector<1x416xf32>
    %77 = vector.broadcast %75 : vector<1x416xf32> to vector<2x416xf32>
    %78 = arith.mulf %49, %77 : vector<2x416xf32>
    %79 = vector.broadcast %76 : vector<1x416xf32> to vector<2x416xf32>
    %80 = arith.addf %78, %79 : vector<2x416xf32>
    %cst_51 = arith.constant 0.000000e+00 : f32
    %81 = vector.broadcast %cst_51 : f32 to vector<2x416xf32>
    %82 = arith.cmpf ogt, %80, %81 : vector<2x416xf32>
    %cst_52 = arith.constant 2.000000e-01 : f32
    %83 = vector.broadcast %cst_52 : f32 to vector<2x416xf32>
    %84 = arith.mulf %83, %80 : vector<2x416xf32>
    %85 = arith.select %82, %80, %84 : vector<2x416xi1>, vector<2x416xf32>
    %c0_53 = arith.constant 0 : index
    %c0_54 = arith.constant 0 : index
    %86 = vector.load %arg14[%c0_53, %c0_54] : memref<416x1xf32, #tpu.memory_space<vmem>>, vector<416x1xf32>
    %cst_55 = arith.constant dense<0.000000e+00> : vector<2x1xf32>
    %87 = tpu.matmul %85, %86, %cst_55 {dimension_numbers = #tpu.dot_dimension_numbers<[1], [0], [0], [1], [0, 0, 1, 1], [], []>} : vector<2x416xf32>, vector<416x1xf32>, vector<2x1xf32> -> vector<2x1xf32>
    %c0_56 = arith.constant 0 : index
    %c0_57 = arith.constant 0 : index
    %88 = vector.load %arg15[%c0_56, %c0_57] : memref<1x1xf32, #tpu.memory_space<vmem>>, vector<1x1xf32>
    %89 = vector.broadcast %88 : vector<1x1xf32> to vector<2x1xf32>
    %90 = arith.addf %87, %89 : vector<2x1xf32>
    %cst_58 = arith.constant 0.000000e+00 : f32
    %91 = vector.broadcast %cst_58 : f32 to vector<2x1xf32>
    %92 = arith.subf %91, %90 : vector<2x1xf32>
    %93 = math.exp %92 : vector<2x1xf32>
    %cst_59 = arith.constant 1.000000e+00 : f32
    %94 = vector.broadcast %cst_59 : f32 to vector<2x1xf32>
    %95 = arith.addf %94, %93 : vector<2x1xf32>
    %96 = tpu.reciprocal %95 : vector<2x1xf32> -> vector<2x1xf32>
    %c0_60 = arith.constant 0 : index
    %c0_61 = arith.constant 0 : index
    %97 = vector.load %arg16[%c0_60, %c0_61] : memref<2x1xf32, #tpu.memory_space<vmem>>, vector<2x1xf32>
    tpu.vector_store %arg16[%c0_60, %c0_61], %96 {strides = array<i32>} : memref<2x1xf32, #tpu.memory_space<vmem>>, vector<2x1xf32>,
    return
  }
}

</mosaic_0001>

<bundles_post_ra>
// kernel: discriminator_forward.1
= control target key start
LH: loop header
LB: loop body
LE: loop exit
PB: predicated region body
PF: predicated region fallthrough
CT: control target
= control target key end

     0   :  { %vm206_vm0 = vcmask 752640   ;;  %vm209_vm1 = vcmask 1043456   ;;  %vm4119_vm2 = vmmov 1   ;;  %vm4121_vm4 = vmmov 0   ;;  %s6078_s1 = inlined_call_operand.vmem [shape: f32[220,560], index: 1, kind: input, shape index: {}]   ;;  %s6079_s0 = inlined_call_operand.vmem [shape: f32[2,220], index: 0, kind: input, shape index: {}]   ;;  %s6080_s5 = inlined_call_operand.vmem [shape: f32[560,32], index: 5, kind: input, shape index: {}]   ;;  %s6081_s6 = inlined_call_operand.vmem [shape: f32[32,560], index: 6, kind: input, shape index: {}]   ;;  %s6082_s4 = inlined_call_operand.vmem [shape: f32[1,32], index: 4, kind: input, shape index: {}]   ;;  %s6083_s2 = inlined_call_operand.vmem [shape: f32[1,32], index: 2, kind: input, shape index: {}]   ;;  %s6084_s3 = inlined_call_operand.vmem [shape: f32[1,32], index: 3, kind: input, shape index: {}]   ;;  %s6085_s7 = inlined_call_operand.vmem [shape: f32[560,64], index: 7, kind: input, shape index: {}]   ;;  %s6086_s9 = inlined_call_operand.vmem [shape: f32[64,416], index: 9, kind: input, shape index: {}]   ;;  %s6087_s12 = inlined_call_operand.vmem [shape: f32[416,32], index: 12, kind: input, shape index: {}]   ;;  %s6088_s8 = inlined_call_operand.vmem [shape: f32[1,64], index: 8, kind: input, shape index: {}]   ;;  %s6089_s13 = inlined_call_operand.vmem [shape: f32[32,416], index: 13, kind: input, shape index: {}]   ;;  %s6090_s10 = inlined_call_operand.vmem [shape: f32[1,32], index: 10, kind: input, shape index: {}]   ;;  %s6091_s14 = inlined_call_operand.vmem [shape: f32[416,1], index: 14, kind: input, shape index: {}]   ;;  %s6092_s11 = inlined_call_operand.vmem [shape: f32[1,32], index: 11, kind: input, shape index: {}]   ;;  %s6093_s15 = inlined_call_operand.<no memory space> [shape: f32[1,1], index: 15, kind: input, shape index: {}]   ;;  %s6094_s16 = inlined_call_operand.vmem [shape: f32[2,1], index: 16, kind: output, shape index: {}]  }
   0x1   :  { %6096 = sst [smem:[#allocation3_spill]] %s6078_s1  ;;  %vm4528_vm3 = vmpackc.low %vm209_vm1, %vm4119_vm2  ;;  %vm530_vm5 = vcmask 1041408   ;;  %vm559_vm6 = vcmask 386048   ;;  %vm607_vm7 = vcmask 392192   ;;  %vm1044_vm8 = vcmask 261120  }
   0x2   :  { %s6097_s23 = sld [smem:[#allocation3_spill]]  ;;  %vm1865_vm14 = vcmask 523264  }
   0x8   :  { %v57_v0 = vld [vmem:[%s6097_s23 + $0x8] sm:$0xff]  ;;  %v62_v1 = vld [vmem:[%s6097_s23 + $0x30] sm:$0xff]  ;;  %v56_v2 = vld [vmem:[%s6097_s23] sm:$0xff] }
   0x9   :  { %v3435_v3 = vpack.c.bf16 %v62_v1, %v57_v0  ;;  %v61_v4 = vld [vmem:[%s6097_s23 + $0x28] sm:$0xff]  ;;  %v67_v5 = vld [vmem:[%s6097_s23 + $0x58] sm:$0xff]  ;;  %v72_v6 = vld [vmem:[%s6097_s23 + $0x80] sm:$0xff] }
   0xa   :  { %v3437_v7 = vpack.c.bf16 %v61_v4, %v56_v2  ;;  %v3439_v8 = vpack.c.bf16 %v72_v6, %v67_v5  ;;  %v66_v9 = vld [vmem:[%s6097_s23 + $0x50] sm:$0xff]  ;;  %v71_v10 = vld [vmem:[%s6097_s23 + $0x78] sm:$0xff]  ;;  %v77_v11 = vld [vmem:[%s6097_s23 + $0xa8] sm:$0xff] }
   0xb   :  { %3436 = vmatprep.subr.bf16.mxu0 %v3435_v3  ;;  %v82_v12 = vld [vmem:[%s6097_s23 + $0xd0] sm:$0xff]  ;;  %v3441_v13 = vpack.c.bf16 %v71_v10, %v66_v9  ;;  %v76_v15 = vld [vmem:[%s6097_s23 + $0xa0] sm:$0xff]  ;;  %v81_v16 = vld [vmem:[%s6097_s23 + $0xc8] sm:$0xff] }
   0xc   :  { %3438 = vmatpush1.bf16.msra.mxu0 %v3437_v7  ;;  %v3443_v14 = vpack.c.bf16 %v82_v12, %v77_v11  ;;  %v87_v17 = vld [vmem:[%s6097_s23 + $0xf8] sm:$0xff]  ;;  %v92_v18 = vld [vmem:[%s6097_s23 + $0x120] sm:$0xff]  ;;  %v3445_v19 = vpack.c.bf16 %v81_v16, %v76_v15  ;;  %v86_v21 = vld [vmem:[%s6097_s23 + $0xf0] sm:$0xff] }
   0xd   :  { %3440 = vmatprep.subr.bf16.mxu0 %v3439_v8  ;;  %v3447_v20 = vpack.c.bf16 %v92_v18, %v87_v17  ;;  %v91_v22 = vld [vmem:[%s6097_s23 + $0x118] sm:$0xff]  ;;  %v97_v23 = vld [vmem:[%s6097_s23 + $0x148] sm:$0xff]  ;;  %v102_v24 = vld [vmem:[%s6097_s23 + $0x170] sm:$0xff] }
   0xe   :  { %v59_v25 = vld [vmem:[%s6097_s23 + $0x18] sm:$0xff]  ;;  %v64_v26 = vld [vmem:[%s6097_s23 + $0x40] sm:$0xff]  ;;  %v3449_v27 = vpack.c.bf16 %v91_v22, %v86_v21  ;;  %v58_v30 = vld [vmem:[%s6097_s23 + $0x10] sm:$0xff]  ;;  %v3451_v32 = vpack.c.bf16 %v102_v24, %v97_v23 }
   0xf   :  { %v96_v28 = vld [vmem:[%s6097_s23 + $0x140] sm:$0xff]  ;;  %v3493_v29 = vpack.c.bf16 %v64_v26, %v59_v25  ;;  %v63_v31 = vld [vmem:[%s6097_s23 + $0x38] sm:$0xff]  ;;  %v101_v33 = vld [vmem:[%s6097_s23 + $0x168] sm:$0xff] }
  0x10   :  { %3442 = vmatpush1.bf16.msra.mxu0 %v3441_v13  ;;  %v3495_v34 = vpack.c.bf16 %v63_v31, %v58_v30  ;;  %v69_v35 = vld [vmem:[%s6097_s23 + $0x68] sm:$0xff]  ;;  %v74_v36 = vld [vmem:[%s6097_s23 + $0x90] sm:$0xff]  ;;  %v107_v37 = vld [vmem:[%s6097_s23 + $0x198] sm:$0xff]  ;;  %v3453_v42 = vpack.c.bf16 %v101_v33, %v96_v28 }
  0x11   :  { %3444 = vmatprep.subr.bf16.mxu0 %v3443_v14  ;;  %v112_v38 = vld [vmem:[%s6097_s23 + $0x1c0] sm:$0xff]  ;;  %3494 = vmatprep.subr.bf16.mxu1 %v3493_v29  ;;  %v3497_v39 = vpack.c.bf16 %v74_v36, %v69_v35  ;;  %v73_v41 = vld [vmem:[%s6097_s23 + $0x88] sm:$0xff]  ;;  %v106_v43 = vld [vmem:[%s6097_s23 + $0x190] sm:$0xff] }
  0x12   :  { %v68_v40 = vld [vmem:[%s6097_s23 + $0x60] sm:$0xff]  ;;  %3496 = vmatpush1.bf16.msra.mxu1 %v3495_v34  ;;  %v79_v45 = vld [vmem:[%s6097_s23 + $0xb8] sm:$0xff]  ;;  %v3455_v47 = vpack.c.bf16 %v112_v38, %v107_v37  ;;  %v78_v50 = vld [vmem:[%s6097_s23 + $0xb0] sm:$0xff] }
  0x13   :  { %3498 = vmatprep.subr.bf16.mxu1 %v3497_v39  ;;  %v3499_v44 = vpack.c.bf16 %v73_v41, %v68_v40  ;;  %v84_v46 = vld [vmem:[%s6097_s23 + $0xe0] sm:$0xff]  ;;  %v111_v48 = vld [vmem:[%s6097_s23 + $0x1b8] sm:$0xff]  ;;  %v117_v52 = vld [vmem:[%s6097_s23 + $0x1e8] sm:$0xff] }
  0x14   :  { %3446 = vmatpush1.bf16.msra.mxu0 %v3445_v19  ;;  %v3501_v49 = vpack.c.bf16 %v84_v46, %v79_v45  ;;  %v83_v51 = vld [vmem:[%s6097_s23 + $0xd8] sm:$0xff]  ;;  %v122_v53 = vld [vmem:[%s6097_s23 + $0x210] sm:$0xff]  ;;  %v89_v54 = vld [vmem:[%s6097_s23 + $0x108] sm:$0xff]  ;;  %v3457_v57 = vpack.c.bf16 %v111_v48, %v106_v43 }
  0x15   :  { %3448 = vmatprep.subr.bf16.mxu0 %v3447_v20  ;;  %v3503_v55 = vpack.c.bf16 %v83_v51, %v78_v50  ;;  %v94_v56 = vld [vmem:[%s6097_s23 + $0x130] sm:$0xff]  ;;  %v116_v58 = vld [vmem:[%s6097_s23 + $0x1e0] sm:$0xff]  ;;  %v93_v61 = vld [vmem:[%s6097_s23 + $0x128] sm:$0xff]  ;;  %v3459_v62 = vpack.c.bf16 %v122_v53, %v117_v52 }
  0x16   :  { %3500 = vmatpush1.bf16.msra.mxu1 %v3499_v44  ;;  %v3505_v59 = vpack.c.bf16 %v94_v56, %v89_v54  ;;  %v88_v60 = vld [vmem:[%s6097_s23 + $0x100] sm:$0xff]  ;;  %v121_v63 = vld [vmem:[%s6097_s23 + $0x208] sm:$0xff]  ;;  %v99_v0 = vld [vmem:[%s6097_s23 + $0x158] sm:$0xff] }
  0x17   :  { %3502 = vmatprep.subr.bf16.mxu1 %v3501_v49  ;;  %v104_v1 = vld [vmem:[%s6097_s23 + $0x180] sm:$0xff]  ;;  %v127_v2 = vld [vmem:[%s6097_s23 + $0x238] sm:$0xff]  ;;  %v3507_v4 = vpack.c.bf16 %v93_v61, %v88_v60  ;;  %v3461_v5 = vpack.c.bf16 %v121_v63, %v116_v58  ;;  %v126_v6 = vld [vmem:[%s6097_s23 + $0x230] sm:$0xff] }
  0x18   :  { %3450 = vmatpush1.bf16.msra.mxu0 %v3449_v27  ;;  %v132_v3 = vld [vmem:[%s6097_s23 + $0x260] sm:$0xff]  ;;  %v3509_v7 = vpack.c.bf16 %v104_v1, %v99_v0  ;;  %v98_v8 = vld [vmem:[%s6097_s23 + $0x150] sm:$0xff]  ;;  %v103_v9 = vld [vmem:[%s6097_s23 + $0x178] sm:$0xff] }
  0x19   :  { %3452 = vmatprep.subr.bf16.mxu0 %v3451_v32  ;;  %v3463_v10 = vpack.c.bf16 %v132_v3, %v127_v2  ;;  %v131_v11 = vld [vmem:[%s6097_s23 + $0x258] sm:$0xff]  ;;  %v109_v12 = vld [vmem:[%s6097_s23 + $0x1a8] sm:$0xff]  ;;  %v114_v13 = vld [vmem:[%s6097_s23 + $0x1d0] sm:$0xff]  ;;  %v3511_v16 = vpack.c.bf16 %v103_v9, %v98_v8 }
  0x1a   :  { %3504 = vmatpush1.bf16.msra.mxu1 %v3503_v55  ;;  %v137_v14 = vld [vmem:[%s6097_s23 + $0x288] sm:$0xff]  ;;  %v142_v15 = vld [vmem:[%s6097_s23 + $0x2b0] sm:$0xff]  ;;  %v4379_v17 = vld.sshfl [vmem:[%s6079_s0] sm:$0x33 pattern:$0x76325410]  ;;  %v3465_v18 = vpack.c.bf16 %v131_v11, %v126_v6  ;;  %v3513_v20 = vpack.c.bf16 %v114_v13, %v109_v12 }
  0x1b   :  { %3506 = vmatprep.subr.bf16.mxu1 %v3505_v59  ;;  %v136_v19 = vld [vmem:[%s6097_s23 + $0x280] sm:$0xff]  ;;  %v113_v22 = vld [vmem:[%s6097_s23 + $0x1c8] sm:$0xff]  ;;  %v4392_v23 = vcombine.high %v4379_v17, %v4379_v17  ;;  %v3467_v24 = vpack.c.bf16 %v142_v15, %v137_v14  ;;  %v119_v26 = vld [vmem:[%s6097_s23 + $0x1f8] sm:$0xff] }
  0x1c   :  { %3454 = vmatpush1.bf16.msra.mxu0 %v3453_v42  ;;  %v108_v21 = vld [vmem:[%s6097_s23 + $0x1a0] sm:$0xff]  ;;  %v141_v25 = vld [vmem:[%s6097_s23 + $0x2a8] sm:$0xff]  ;;  %v147_v28 = vld [vmem:[%s6097_s23 + $0x2d8] sm:$0xff] }
  0x1d   :  { %3456 = vmatprep.subr.bf16.mxu0 %v3455_v47  ;;  %v124_v27 = vld [vmem:[%s6097_s23 + $0x220] sm:$0xff]  ;;  %2996 = vmatprep.mubr.msk.f32.mxu0 %vm206_vm0, %v4392_v23  ;;  %v3515_v30 = vpack.c.bf16 %v113_v22, %v108_v21  ;;  %v3469_v31 = vpack.c.bf16 %v141_v25, %v136_v19  ;;  %v146_v32 = vld [vmem:[%s6097_s23 + $0x2d0] sm:$0xff]  ;;  %v123_v35 = vld [vmem:[%s6097_s23 + $0x218] sm:$0xff] }
  0x1e   :  { %3508 = vmatpush1.bf16.msra.mxu1 %v3507_v4  ;;  %v152_v29 = vld [vmem:[%s6097_s23 + $0x300] sm:$0xff]  ;;  %2999 = vmatprep.mubr.msk.f32.mxu1 %vm206_vm0, %v4392_v23  ;;  %v3517_v33 = vpack.c.bf16 %v124_v27, %v119_v26  ;;  %v118_v34 = vld [vmem:[%s6097_s23 + $0x1f0] sm:$0xff]  ;;  %v151_v37 = vld [vmem:[%s6097_s23 + $0x2f8] sm:$0xff] }
  0x1f   :  { %3510 = vmatprep.subr.bf16.mxu1 %v3509_v7  ;;  %v3471_v36 = vpack.c.bf16 %v152_v29, %v147_v28  ;;  %v129_v38 = vld [vmem:[%s6097_s23 + $0x248] sm:$0xff]  ;;  %v134_v39 = vld [vmem:[%s6097_s23 + $0x270] sm:$0xff]  ;;  %v3519_v42 = vpack.c.bf16 %v123_v35, %v118_v34  ;;  %v3473_v43 = vpack.c.bf16 %v151_v37, %v146_v32  ;;  %v156_v44 = vld [vmem:[%s6097_s23 + $0x320] sm:$0xff] }
  0x20   :  { %3458 = vmatpush1.bf16.msra.mxu0 %v3457_v57  ;;  %v157_v40 = vld [vmem:[%s6097_s23 + $0x328] sm:$0xff]  ;;  %v162_v41 = vld [vmem:[%s6097_s23 + $0x350] sm:$0xff]  ;;  %v3521_v45 = vpack.c.bf16 %v134_v39, %v129_v38  ;;  %v128_v46 = vld [vmem:[%s6097_s23 + $0x240] sm:$0xff] }
  0x21   :  { %3460 = vmatprep.subr.bf16.mxu0 %v3459_v62  ;;  %v133_v47 = vld [vmem:[%s6097_s23 + $0x268] sm:$0xff]  ;;  %v3475_v48 = vpack.c.bf16 %v162_v41, %v157_v40  ;;  %v139_v50 = vld [vmem:[%s6097_s23 + $0x298] sm:$0xff]  ;;  %v144_v51 = vld [vmem:[%s6097_s23 + $0x2c0] sm:$0xff] }
  0x22   :  { %3512 = vmatpush1.bf16.msra.mxu1 %v3511_v16  ;;  %v161_v49 = vld [vmem:[%s6097_s23 + $0x348] sm:$0xff]  ;;  %v167_v52 = vld [vmem:[%s6097_s23 + $0x378] sm:$0xff]  ;;  %v172_v53 = vld [vmem:[%s6097_s23 + $0x3a0] sm:$0xff]  ;;  %v3523_v54 = vpack.c.bf16 %v133_v47, %v128_v46  ;;  %v3525_v57 = vpack.c.bf16 %v144_v51, %v139_v50 }
  0x23   :  { %3514 = vmatprep.subr.bf16.mxu1 %v3513_v20  ;;  %v3477_v55 = vpack.c.bf16 %v161_v49, %v156_v44  ;;  %v166_v56 = vld [vmem:[%s6097_s23 + $0x370] sm:$0xff]  ;;  %v143_v59 = vld [vmem:[%s6097_s23 + $0x2b8] sm:$0xff]  ;;  %v3479_v60 = vpack.c.bf16 %v172_v53, %v167_v52  ;;  %v149_v62 = vld [vmem:[%s6097_s23 + $0x2e8] sm:$0xff] }
  0x24   :  { %3462 = vmatpush1.bf16.msra.mxu0 %v3461_v5  ;;  %v138_v58 = vld [vmem:[%s6097_s23 + $0x290] sm:$0xff]  ;;  %v171_v61 = vld [vmem:[%s6097_s23 + $0x398] sm:$0xff]  ;;  %v177_v0 = vld [vmem:[%s6097_s23 + $0x3c8] sm:$0xff] }
  0x25   :  { %3464 = vmatprep.subr.bf16.mxu0 %v3463_v10  ;;  %v154_v63 = vld [vmem:[%s6097_s23 + $0x310] sm:$0xff]  ;;  %v3527_v2 = vpack.c.bf16 %v143_v59, %v138_v58  ;;  %v3481_v3 = vpack.c.bf16 %v171_v61, %v166_v56  ;;  %v176_v4 = vld [vmem:[%s6097_s23 + $0x3c0] sm:$0xff]  ;;  %v153_v7 = vld [vmem:[%s6097_s23 + $0x308] sm:$0xff] }
  0x26   :  { %3516 = vmatpush1.bf16.msra.mxu1 %v3515_v30  ;;  %v182_v1 = vld [vmem:[%s6097_s23 + $0x3f0] sm:$0xff]  ;;  %v3529_v5 = vpack.c.bf16 %v154_v63, %v149_v62  ;;  %v148_v6 = vld [vmem:[%s6097_s23 + $0x2e0] sm:$0xff]  ;;  %v181_v9 = vld [vmem:[%s6097_s23 + $0x3e8] sm:$0xff] }
  0x27   :  { %3518 = vmatprep.subr.bf16.mxu1 %v3517_v33  ;;  %v3483_v8 = vpack.c.bf16 %v182_v1, %v177_v0  ;;  %v159_v10 = vld [vmem:[%s6097_s23 + $0x338] sm:$0xff]  ;;  %v164_v11 = vld [vmem:[%s6097_s23 + $0x360] sm:$0xff]  ;;  %v3531_v14 = vpack.c.bf16 %v153_v7, %v148_v6  ;;  %v3485_v15 = vpack.c.bf16 %v181_v9, %v176_v4  ;;  %v186_v16 = vld [vmem:[%s6097_s23 + $0x410] sm:$0xff] }
  0x28   :  { %3466 = vmatpush1.bf16.msra.mxu0 %v3465_v18  ;;  %v187_v12 = vld [vmem:[%s6097_s23 + $0x418] sm:$0xff]  ;;  %v192_v13 = vld [vmem:[%s6097_s23 + $0x440] sm:$0xf]  ;;  %v3533_v18 = vpack.c.bf16 %v164_v11, %v159_v10  ;;  %v158_v19 = vld [vmem:[%s6097_s23 + $0x330] sm:$0xff] }
  0x29   :  { %3468 = vmatprep.subr.bf16.mxu0 %v3467_v24  ;;  %v163_v20 = vld [vmem:[%s6097_s23 + $0x358] sm:$0xff]  ;;  %v3487_v21 = vpack.c.bf16 %v192_v13, %v187_v12  ;;  %v169_v24 = vld [vmem:[%s6097_s23 + $0x388] sm:$0xff]  ;;  %v174_v25 = vld [vmem:[%s6097_s23 + $0x3b0] sm:$0xff] }
  0x2a   :  { %3520 = vmatpush1.bf16.msra.mxu1 %v3519_v42  ;;  %v191_v22 = vld [vmem:[%s6097_s23 + $0x438] sm:$0xf]  ;;  %v3535_v27 = vpack.c.bf16 %v163_v20, %v158_v19  ;;  %v60_v29 = vld [vmem:[%s6097_s23 + $0x20] sm:$0xff]  ;;  %v3537_v30 = vpack.c.bf16 %v174_v25, %v169_v24  ;;  %v173_v32 = vld [vmem:[%s6097_s23 + $0x3a8] sm:$0xff]  ;;  %v4120_v42 = vmov 0.0|0.0  }
  0x2b   :  { %3522 = vmatprep.subr.bf16.mxu1 %v3521_v45  ;;  %v3490_v28 = vpack.c.bf16 %v191_v22, %v186_v16  ;;  %v65_v33 = vld [vmem:[%s6097_s23 + $0x48] sm:$0xff]  ;;  %v179_v34 = vld [vmem:[%s6097_s23 + $0x3d8] sm:$0xff]  ;;  %v184_v35 = vld [vmem:[%s6097_s23 + $0x400] sm:$0xff] }
  0x2c   :  { %3470 = vmatpush1.bf16.msra.mxu0 %v3469_v31  ;;  %v168_v31 = vld [vmem:[%s6097_s23 + $0x380] sm:$0xff]  ;;  %v3552_v37 = vpack.c.bf16 %v65_v33, %v60_v29  ;;  %v70_v38 = vld [vmem:[%s6097_s23 + $0x70] sm:$0xff]  ;;  %v3541_v39 = vpack.c.bf16 %v184_v35, %v179_v34  ;;  %v183_v41 = vld [vmem:[%s6097_s23 + $0x3f8] sm:$0xff] }
  0x2d   :  { %3472 = vmatprep.subr.bf16.mxu0 %v3471_v36  ;;  %v3539_v36 = vpack.c.bf16 %v173_v32, %v168_v31  ;;  %v178_v40 = vld [vmem:[%s6097_s23 + $0x3d0] sm:$0xff]  ;;  %v189_v44 = vld [vmem:[%s6097_s23 + $0x428] sm:$0xff]  ;;  %v188_v50 = vld [vmem:[%s6097_s23 + $0x420] sm:$0xff] }
  0x2e   :  { %3524 = vmatpush1.bf16.msra.mxu1 %v3523_v54  ;;  %v194_v45 = vld [vmem:[%s6097_s23 + $0x450] sm:$0xf]  ;;  %v3543_v46 = vpack.c.bf16 %v183_v41, %v178_v40  ;;  %v193_v51 = vld [vmem:[%s6097_s23 + $0x448] sm:$0xf]  ;;  %v453_v53 = vld [vmem:[%s6080_s5 + $0x80] sm:$0xff] }
  0x2f   :  { %3526 = vmatprep.subr.bf16.mxu1 %v3525_v57  ;;  %v3545_v49 = vpack.c.bf16 %v194_v45, %v189_v44  ;;  %v85_v52 = vld [vmem:[%s6097_s23 + $0xe8] sm:$0xff]  ;;  %v90_v57 = vld [vmem:[%s6097_s23 + $0x110] sm:$0xff]  ;;  %v437_v58 = vld [vmem:[%s6080_s5] sm:$0xff] }
  0x30   :  { %3474 = vmatpush1.bf16.msra.mxu0 %v3473_v43  ;;  %v75_v43 = vld [vmem:[%s6097_s23 + $0x98] sm:$0xff]  ;;  %v454_v54 = vld [vmem:[%s6080_s5 + $0x88] sm:$0xff]  ;;  %v455_v61 = vld [vmem:[%s6080_s5 + $0x90] sm:$0xff] }
  0x31   :  { %3476 = vmatprep.subr.bf16.mxu0 %v3475_v48  ;;  %v3555_v47 = vpack.c.bf16 %v75_v43, %v70_v38  ;;  %v80_v48 = vld [vmem:[%s6097_s23 + $0xc0] sm:$0xff]  ;;  %v438_v59 = vld [vmem:[%s6080_s5 + $0x8] sm:$0xff]  ;;  %v456_v62 = vld [vmem:[%s6080_s5 + $0x98] sm:$0xff] }
  0x32   :  { %3528 = vmatpush1.bf16.msra.mxu1 %v3527_v2  ;;  %v3558_v56 = vpack.c.bf16 %v85_v52, %v80_v48  ;;  %v4620_v63 = vpack.c.bf16 %v438_v59, %v437_v58  ;;  %v100_v1 = vld [vmem:[%s6097_s23 + $0x160] sm:$0xff]  ;;  %v4626_v2 = vpack.c.bf16 %v456_v62, %v455_v61  ;;  %v440_v4 = vld [vmem:[%s6080_s5 + $0x18] sm:$0xff]  ;;  %v458_v7 = vld [vmem:[%s6080_s5 + $0xa8] sm:$0xff] }
  0x33   :  { %3530 = vmatprep.subr.bf16.mxu1 %v3529_v5  ;;  %v105_v5 = vld [vmem:[%s6097_s23 + $0x188] sm:$0xff]  ;;  %v457_v6 = vld [vmem:[%s6080_s5 + $0xa0] sm:$0xff]  ;;  %v110_v10 = vld [vmem:[%s6097_s23 + $0x1b0] sm:$0xff] }
  0x34   :  { %3478 = vmatpush1.bf16.msra.mxu0 %v3477_v55  ;;  %v3548_v55 = vpack.c.bf16 %v193_v51, %v188_v50  ;;  %v3564_v9 = vpack.c.bf16 %v105_v5, %v100_v1  ;;  %v4652_v11 = vpack.c.bf16 %v458_v7, %v457_v6  ;;  %v441_v12 = vld [vmem:[%s6080_s5 + $0x20] sm:$0xff]  ;;  %v442_v13 = vld [vmem:[%s6080_s5 + $0x28] sm:$0xff]  ;;  %v460_v16 = vld [vmem:[%s6080_s5 + $0xb8] sm:$0xff] }
  0x35   :  { %3480 = vmatprep.subr.bf16.mxu0 %v3479_v60  ;;  %v95_v60 = vld [vmem:[%s6097_s23 + $0x138] sm:$0xff]  ;;  %v120_v20 = vld [vmem:[%s6097_s23 + $0x200] sm:$0xff]  ;;  %v443_v22 = vld [vmem:[%s6080_s5 + $0x30] sm:$0xff] }
  0x36   :  { %3532 = vmatpush1.bf16.msra.mxu1 %v3531_v14  ;;  %v3561_v0 = vpack.c.bf16 %v95_v60, %v90_v57  ;;  %v115_v14 = vld [vmem:[%s6097_s23 + $0x1d8] sm:$0xff]  ;;  %v125_v25 = vld [vmem:[%s6097_s23 + $0x228] sm:$0xff]  ;;  %v130_v32 = vld [vmem:[%s6097_s23 + $0x250] sm:$0xff] }
  0x37   :  { %3534 = vmatprep.subr.bf16.mxu1 %v3533_v18  ;;  %v4671_v18 = vpack.c.bf16 %v442_v13, %v441_v12  ;;  %v3567_v19 = vpack.c.bf16 %v115_v14, %v110_v10  ;;  %v444_v24 = vld [vmem:[%s6080_s5 + $0x38] sm:$0xff]  ;;  %v140_v35 = vld [vmem:[%s6097_s23 + $0x2a0] sm:$0xff]  ;;  %v150_v38 = vld [vmem:[%s6097_s23 + $0x2f0] sm:$0xff] }
  0x38   :  { %3482 = vmatpush1.bf16.msra.mxu0 %v3481_v3  ;;  %v439_v3 = vld [vmem:[%s6080_s5 + $0x10] sm:$0xff]  ;;  %v4696_v29 = vpack.c.bf16 %v444_v24, %v443_v22  ;;  %v135_v33 = vld [vmem:[%s6097_s23 + $0x278] sm:$0xff]  ;;  %v160_v41 = vld [vmem:[%s6097_s23 + $0x340] sm:$0xff] }
  0x39   :  { %3484 = vmatprep.subr.bf16.mxu0 %v3483_v8  ;;  %v4646_v8 = vpack.c.bf16 %v440_v4, %v439_v3  ;;  %v3573_v34 = vpack.c.bf16 %v135_v33, %v130_v32  ;;  %v165_v43 = vld [vmem:[%s6097_s23 + $0x368] sm:$0xff]  ;;  %v170_v45 = vld [vmem:[%s6097_s23 + $0x390] sm:$0xff]  ;;  %v180_v48 = vld [vmem:[%s6097_s23 + $0x3e0] sm:$0xff]  ;;  %v4122_v32 = vmov 0.0  }
  0x3a   :  { %3536 = vmatpush1.bf16.msra.mxu1 %v3535_v27  ;;  %v461_v27 = vld [vmem:[%s6080_s5 + $0xc0] sm:$0xff]  ;;  %v3582_v44 = vpack.c.bf16 %v165_v43, %v160_v41  ;;  %v190_v51 = vld [vmem:[%s6097_s23 + $0x430] sm:$0xff]  ;;  %v195_v52 = vld [vmem:[%s6097_s23 + $0x458] sm:$0xf] }
  0x3b   :  { %3538 = vmatprep.subr.bf16.mxu1 %v3537_v30  ;;  %v3570_v30 = vpack.c.bf16 %v125_v25, %v120_v20  ;;  %v463_v26 = vld [vmem:[%s6080_s5 + $0xd0] sm:$0xff]  ;;  %v448_v59 = vld [vmem:[%s6080_s5 + $0x58] sm:$0xff]  ;;  %v465_v61 = vld [vmem:[%s6080_s5 + $0xe0] sm:$0xff] }
  0x3c   :  { %3486 = vmatpush1.bf16.msra.mxu0 %v3485_v15  ;;  %v459_v15 = vld [vmem:[%s6080_s5 + $0xb0] sm:$0xff]  ;;  %v466_v62 = vld [vmem:[%s6080_s5 + $0xe8] sm:$0xff]  ;;  %v449_v1 = vld [vmem:[%s6080_s5 + $0x60] sm:$0xff] }
  0x3d   :  { %3489 = vmatprep.subr.msk.bf16.mxu0 %vm4528_vm3, %v3487_v21  ;;  %v4677_v21 = vpack.c.bf16 %v460_v16, %v459_v15  ;;  %v447_v58 = vld [vmem:[%s6080_s5 + $0x50] sm:$0xff]  ;;  %v450_v3 = vld [vmem:[%s6080_s5 + $0x68] sm:$0xff]  ;;  %v468_v6 = vld [vmem:[%s6080_s5 + $0xf8] sm:$0xff] }
  0x3e   :  { %3540 = vmatpush1.bf16.msra.mxu1 %v3539_v36  ;;  %v145_v36 = vld [vmem:[%s6097_s23 + $0x2c8] sm:$0xff]  ;;  %v4780_v60 = vpack.c.bf16 %v448_v59, %v447_v58  ;;  %v4798_v4 = vpack.c.bf16 %v450_v3, %v449_v1  ;;  %v467_v5 = vld [vmem:[%s6080_s5 + $0xf0] sm:$0xff]  ;;  %v452_v10 = vld [vmem:[%s6080_s5 + $0x78] sm:$0xff] }
  0x3f   :  { %3542 = vmatprep.subr.bf16.mxu1 %v3541_v39  ;;  %v155_v39 = vld [vmem:[%s6097_s23 + $0x318] sm:$0xff]  ;;  %v4808_v7 = vpack.c.bf16 %v468_v6, %v467_v5  ;;  %v485_v13 = vld [vmem:[%s6080_s5 + $0x180] sm:$0xff]  ;;  %v486_v14 = vld [vmem:[%s6080_s5 + $0x188] sm:$0xff] }
  0x40   :  { %3492 = vmatpush1.bf16.msk.msra.mxu0 %vm4528_vm3, %v3490_v28  ;;  %v462_v28 = vld [vmem:[%s6080_s5 + $0xc8] sm:$0xff]  ;;  %v3579_v40 = vpack.c.bf16 %v155_v39, %v150_v38  ;;  %v3626_v15 = vpack.c.bf16 %v486_v14, %v485_v13  ;;  %v501_v16 = vld [vmem:[%s6080_s5 + $0x200] sm:$0xff]  ;;  %v503_v22 = vld [vmem:[%s6080_s5 + $0x210] sm:$0xff] }
  0x41   :  { %3551 = vmatprep.subr.bf16.mxu0 %v4120_v42  ;;  %v4699_v31 = vpack.c.bf16 %v462_v28, %v461_v27  ;;  %v504_v24 = vld [vmem:[%s6080_s5 + $0x218] sm:$0xff]  ;;  %v505_v27 = vld [vmem:[%s6080_s5 + $0x220] sm:$0xff]  ;;  %v506_v28 = vld [vmem:[%s6080_s5 + $0x228] sm:$0xff] }
  0x42   :  { %3544 = vmatpush1.bf16.msra.mxu1 %v3543_v46  ;;  %v175_v46 = vld [vmem:[%s6097_s23 + $0x3b8] sm:$0xff]  ;;  %v4842_v25 = vpack.c.bf16 %v504_v24, %v503_v22  ;;  %v471_v59 = vld [vmem:[%s6080_s5 + $0x110] sm:$0xff]  ;;  %v489_v1 = vld [vmem:[%s6080_s5 + $0x1a0] sm:$0xff] }
  0x43   :  { %290 = vmatmul.mubr.f32.vlgmr.msra.gmra.mrb[0].mxu0 %v4379_v17  ;;  %3547 = vmatprep.subr.msk.bf16.mxu1 %vm4528_vm3, %v3545_v49  ;;  %v185_v49 = vld [vmem:[%s6097_s23 + $0x408] sm:$0xff] }
  0x44   :  { %3553 = vmatpush1.bf16.msra.mxu0 %v3552_v37  ;;  %3001 = vmatprep.mubr.msk.f32.mxu0 %vm206_vm0, %v4392_v23  ;;  %v4600_v23 = vpack.c.bf16 %v454_v54, %v453_v53  ;;  %v3576_v37 = vpack.c.bf16 %v145_v36, %v140_v35  ;;  %v3588_v50 = vpack.c.bf16 %v185_v49, %v180_v48  ;;  %v445_v54 = vld [vmem:[%s6080_s5 + $0x40] sm:$0xff]  ;;  %v470_v48 = vld [vmem:[%s6080_s5 + $0x108] sm:$0xff]  ;;  %vm2102_vm0 = vcmask 254976  }
  0x45   :  { %3554 = vmatprep.subr.bf16.mxu0 %v4120_v42  ;;  %v3591_v53 = vpack.c.bf16 %v195_v52, %v190_v51  ;;  %v488_v51 = vld [vmem:[%s6080_s5 + $0x198] sm:$0xff]  ;;  %v490_v3 = vld [vmem:[%s6080_s5 + $0x1a8] sm:$0xff] }
  0x46   :  { %3550 = vmatpush1.bf16.msk.msra.mxu1 %vm4528_vm3, %v3548_v55  ;;  %v446_v55 = vld [vmem:[%s6080_s5 + $0x48] sm:$0xff] }
  0x47   :  { %3595 = vmatprep.subr.bf16.mxu1 %v4600_v23  ;;  %v474_v13 = vld [vmem:[%s6080_s5 + $0x128] sm:$0xff] }
  0x48   :  { %3556 = vmatpush1.bf16.msra.mxu0 %v3555_v47  ;;  %v3585_v47 = vpack.c.bf16 %v175_v46, %v170_v45 }
  0x49   :  { %3557 = vmatprep.subr.bf16.mxu0 %v4120_v42  ;;  %361 = vmatmul.mubr.f32.vlgmr.msra.gmra.mrb[0].mxu1 %v4379_v17 }
  0x4a   :  { %3597 = vmatpush3.bf16.msra.mxu1 %v4620_v63 }
  0x4b   :  { %3599 = vmatprep.subr.bf16.mxu1 %v4626_v2 }
  0x4c   :  { %3559 = vmatpush1.bf16.msra.mxu0 %v3558_v56  ;;  %v4763_v56 = vpack.c.bf16 %v446_v55, %v445_v54 }
  0x4d   :  { %3560 = vmatprep.subr.bf16.mxu0 %v4120_v42 }
  0x4e   :  { %3601 = vmatpush3.bf16.msra.mxu1 %v4646_v8 }
  0x4f   :  { %3603 = vmatprep.subr.bf16.mxu1 %v4652_v11 }
  0x50   :  { %3562 = vmatpush1.bf16.msra.mxu0 %v3561_v0  ;;  %v4790_v0 = vpack.c.bf16 %v466_v62, %v465_v61  ;;  %v472_v61 = vld [vmem:[%s6080_s5 + $0x118] sm:$0xff] }
  0x51   :  { %3563 = vmatprep.subr.bf16.mxu0 %v4120_v42  ;;  %v4900_v6 = vpack.c.bf16 %v472_v61, %v471_v59  ;;  %v480_v59 = vld [vmem:[%s6080_s5 + $0x158] sm:$0xff] }
  0x52   :  { %3605 = vmatpush3.bf16.msra.mxu1 %v4671_v18 }
  0x53   :  { %3607 = vmatprep.subr.bf16.mxu1 %v4677_v21 }
  0x54   :  { %3565 = vmatpush1.bf16.msra.mxu0 %v3564_v9  ;;  %v451_v9 = vld [vmem:[%s6080_s5 + $0x70] sm:$0xff] }
  0x55   :  { %3566 = vmatprep.subr.bf16.mxu0 %v4120_v42  ;;  %v4816_v12 = vpack.c.bf16 %v452_v10, %v451_v9  ;;  %v4903_v9 = vpack.c.bf16 %v490_v3, %v489_v1  ;;  %v473_v10 = vld [vmem:[%s6080_s5 + $0x120] sm:$0xff]  ;;  %v498_v1 = vld [vmem:[%s6080_s5 + $0x1e8] sm:$0xff] }
  0x56   :  { %3609 = vmatpush3.bf16.msra.mxu1 %v4696_v29  ;;  %v4920_v24 = vpack.c.bf16 %v474_v13, %v473_v10  ;;  %v481_v13 = vld [vmem:[%s6080_s5 + $0x160] sm:$0xff] }
  0x57   :  { %3611 = vmatprep.subr.bf16.mxu1 %v4699_v31 }
  0x58   :  { %3568 = vmatpush1.bf16.msra.mxu0 %v3567_v19  ;;  %v502_v19 = vld [vmem:[%s6080_s5 + $0x208] sm:$0xff] }
  0x59   :  { %3569 = vmatprep.subr.bf16.mxu0 %v4120_v42  ;;  %v4832_v20 = vpack.c.bf16 %v502_v19, %v501_v16  ;;  %v492_v16 = vld [vmem:[%s6080_s5 + $0x1b8] sm:$0xff] }
  0x5a   :  { %3613 = vmatpush3.bf16.msra.mxu1 %v4763_v56 }
  0x5c   :  { %3571 = vmatpush1.bf16.msra.mxu0 %v3570_v30  ;;  %v4852_v30 = vpack.c.bf16 %v506_v28, %v505_v27 }
  0x5d   :  { %3572 = vmatprep.subr.bf16.mxu0 %v4120_v42 }
  0x60   :  { %3574 = vmatpush1.bf16.msra.mxu0 %v3573_v34 }
  0x61   :  { %3575 = vmatprep.subr.bf16.mxu0 %v4120_v42 }
  0x64   :  { %3577 = vmatpush1.bf16.msra.mxu0 %v3576_v37 }
  0x65   :  { %3578 = vmatprep.subr.bf16.mxu0 %v4120_v42 }
  0x68   :  { %3580 = vmatpush1.bf16.msra.mxu0 %v3579_v40 }
  0x69   :  { %3581 = vmatprep.subr.bf16.mxu0 %v4120_v42 }
  0x6c   :  { %3583 = vmatpush1.bf16.msra.mxu0 %v3582_v44 }
  0x6d   :  { %3584 = vmatprep.subr.bf16.mxu0 %v4120_v42 }
  0x70   :  { %3586 = vmatpush1.bf16.msra.mxu0 %v3585_v47  ;;  %v469_v47 = vld [vmem:[%s6080_s5 + $0x100] sm:$0xff] }
  0x71   :  { %3587 = vmatprep.subr.bf16.mxu0 %v4120_v42  ;;  %v4881_v55 = vpack.c.bf16 %v470_v48, %v469_v47  ;;  %v478_v47 = vld [vmem:[%s6080_s5 + $0x148] sm:$0xff] }
  0x74   :  { %3589 = vmatpush1.bf16.msra.mxu0 %v3588_v50  ;;  %v487_v50 = vld [vmem:[%s6080_s5 + $0x190] sm:$0xff] }
  0x75   :  { %3590 = vmatprep.subr.bf16.mxu0 %v4120_v42  ;;  %v4885_v58 = vpack.c.bf16 %v488_v51, %v487_v50  ;;  %v496_v50 = vld [vmem:[%s6080_s5 + $0x1d8] sm:$0xff] }
  0x78   :  { %3593 = vmatpush1.bf16.msk.msra.mxu0 %vm4528_vm3, %v3591_v53 }
  0x79   :  { %3658 = vmatprep.subr.bf16.mxu0 %v4120_v42 }
  0x7b   :  { %432 = vmatmul.mubr.f32.vlgmr.msra.gmra.mrb[2].mxu0 %v4379_v17  ;;  %v464_v17 = vld [vmem:[%s6080_s5 + $0xd8] sm:$0xff] }
  0x7c   :  { %v4772_v57 = vpack.c.bf16 %v464_v17, %v463_v26  ;;  %3660 = vmatpush3.bf16.msra.mxu0 %v4832_v20  ;;  %3380 = vmatprep.mubr.msk.f32.mxu0 %vm4121_vm4, %v4122_v32 }
  0x7d   :  { %3661 = vmatprep.subr.bf16.mxu0 %v4120_v42 }
  0x7e   :  { %3615 = vmatprep.subr.bf16.mxu1 %v4772_v57 }
  0x7f   :  { %3617 = vmatpush3.bf16.msra.mxu1 %v4780_v60 }
  0x80   :  { %3619 = vmatprep.subr.bf16.mxu1 %v4790_v0  ;;  %3663 = vmatpush3.bf16.msra.mxu0 %v4842_v25 }
  0x81   :  { %3664 = vmatprep.subr.bf16.mxu0 %v4120_v42 }
  0x83   :  { %3621 = vmatpush3.bf16.msra.mxu1 %v4798_v4 }
  0x84   :  { %3623 = vmatprep.subr.bf16.mxu1 %v4808_v7  ;;  %3666 = vmatpush3.bf16.msra.mxu0 %v4852_v30 }
  0x85   :  { %3700 = vmatprep.subr.bf16.mxu0 %v3626_v15 }
  0x87   :  { %3625 = vmatpush3.bf16.msra.mxu1 %v4816_v12 }
  0x88   :  { %3627 = vmatprep.subr.bf16.mxu1 %v3626_v15  ;;  %v491_v15 = vld [vmem:[%s6080_s5 + $0x1b0] sm:$0xff] }
  0x89   :  { %v4925_v28 = vpack.c.bf16 %v492_v16, %v491_v15  ;;  %v499_v15 = vld [vmem:[%s6080_s5 + $0x1f0] sm:$0xff]  ;;  %v500_v16 = vld [vmem:[%s6080_s5 + $0x1f8] sm:$0xff] }
 0x116   :  { %v4857_v33 = vpop.f32.mrb[0].mxu0 }
 0x117   :  { %v531_v34 = vsel %vm530_vm5, %v4857_v33, 0.0  ;;  %v4861_v35 = vpop.f32.mrb[1].mxu0 }
 0x118   :  { %v532_v36 = vrot.slane %v531_v34, 4  ;;  %v538_v37 = vsel %vm530_vm5, %v4861_v35, 0.0  ;;  %v568_v19 = vmul.f32 %v4861_v35, %v4861_v35 }
 0x119   :  { %v539_v38 = vrot.slane %v538_v37, 4 }
 0x11a   :  { %v533_v39 = vadd.f32 %v532_v36, %v531_v34  ;;  %v475_v34 = vld [vmem:[%s6080_s5 + $0x130] sm:$0xff]  ;;  %v476_v36 = vld [vmem:[%s6080_s5 + $0x138] sm:$0xff] }
 0x11b   :  { %v540_v40 = vadd.f32 %v539_v38, %v538_v37  ;;  %v493_v38 = vld [vmem:[%s6080_s5 + $0x1c0] sm:$0xff] }
 0x11c   :  { %v534_v41 = vrot.slane %v533_v39, 2  ;;  %v4877_v52 = vpop.f32.mrb[0].mxu1 }
 0x11d   :  { %v541_v43 = vrot.slane %v540_v40, 2  ;;  %v4879_v53 = vpop.f32.mrb[1].mxu1  ;;  %v545_v27 = vsel %vm530_vm5, %v4877_v52, 0.0 }
 0x11e   :  { %v535_v44 = vadd.f32 %v534_v41, %v533_v39  ;;  %v552_v26 = vsel %vm530_vm5, %v4879_v53, 0.0  ;;  %v494_v39 = vld [vmem:[%s6080_s5 + $0x1c8] sm:$0xff]  ;;  %v546_v41 = vrot.slane %v545_v27, 4 }
 0x11f   :  { %v542_v45 = vadd.f32 %v541_v43, %v540_v40  ;;  %v553_v62 = vrot.slane %v552_v26, 4  ;;  %v579_v40 = vsel %vm530_vm5, %v568_v19, 0.0 }
 0x120   :  { %v536_v46 = vrot.slane %v535_v44, 1  ;;  %v580_v48 = vrot.slane %v579_v40, 4  ;;  %v547_v51 = vadd.f32 %v546_v41, %v545_v27  ;;  %v570_v41 = vmul.f32 %v4879_v53, %v4879_v53 }
 0x121   :  { %v543_v49 = vrot.slane %v542_v45, 1  ;;  %v554_v5 = vadd.f32 %v553_v62, %v552_v26  ;;  %v497_v62 = vld [vmem:[%s6080_s5 + $0x1e0] sm:$0xff] }
 0x122   :  { %v537_v17 = vadd.f32 %v536_v46, %v535_v44  ;;  %v4941_v44 = vpack.c.bf16 %v476_v36, %v475_v34  ;;  %v477_v46 = vld [vmem:[%s6080_s5 + $0x140] sm:$0xff]  ;;  %v581_v61 = vadd.f32 %v580_v48, %v579_v40  ;;  %v548_v3 = vrot.slane %v547_v51, 2  ;;  %v483_v36 = vld [vmem:[%s6080_s5 + $0x170] sm:$0xff] }
 0x123   :  { %v544_v54 = vadd.f32 %v543_v49, %v542_v45  ;;  %v555_v14 = vrot.slane %v554_v5, 2  ;;  %v4944_v45 = vpack.c.bf16 %v494_v39, %v493_v38  ;;  %v495_v49 = vld [vmem:[%s6080_s5 + $0x1d0] sm:$0xff]  ;;  %v4980_v10 = vpack.c.bf16 %v498_v1, %v497_v62 }
 0x124   :  { %v4962_v26 = vpack.c.bf16 %v496_v50, %v495_v49  ;;  %v582_v19 = vrot.slane %v581_v61, 2  ;;  %v4998_v34 = vpack.c.bf16 %v500_v16, %v499_v15  ;;  %v567_v50 = vmul.f32 %v4857_v33, %v4857_v33 }
 0x125   :  { %675 = vmatprep.mubr.f32.mxu1 %v544_v54  ;;  %v556_v22 = vadd.f32 %v555_v14, %v554_v5  ;;  %v4959_v54 = vpack.c.bf16 %v478_v47, %v477_v46  ;;  %v482_v14 = vld [vmem:[%s6080_s5 + $0x168] sm:$0xff]  ;;  %v593_v47 = vsel %vm530_vm5, %v570_v41, 0.0  ;;  %v514_v41 = vld [vmem:[%s6081_s6 + $0x38] sm:$0xff] }
 0x126   :  { %676 = vmatmul.mubr.f32.vlgmr.msra.gmra.mrb[2].mxu1 %v537_v17  ;;  %v479_v17 = vld [vmem:[%s6080_s5 + $0x150] sm:$0xff]  ;;  %v4995_v27 = vpack.c.bf16 %v482_v14, %v481_v13  ;;  %v583_v38 = vadd.f32 %v582_v19, %v581_v61  ;;  %v594_v49 = vrot.slane %v593_v47, 4 }
 0x127   :  { %3629 = vmatpush3.bf16.msra.mxu1 %v4881_v55  ;;  %v557_v37 = vrot.slane %v556_v22, 1  ;;  %v4977_v5 = vpack.c.bf16 %v480_v59, %v479_v17  ;;  %v572_v17 = vsel %vm530_vm5, %v567_v50, 0.0 }
 0x128   :  { %3631 = vmatprep.subr.bf16.mxu1 %v4885_v58  ;;  %v573_v61 = vrot.slane %v572_v17, 4 }
 0x129   :  { %v558_v43 = vadd.f32 %v557_v37, %v556_v22  ;;  %v549_v22 = vadd.f32 %v548_v3, %v547_v51  ;;  %v484_v37 = vld [vmem:[%s6080_s5 + $0x178] sm:$0xff]  ;;  %v595_v51 = vadd.f32 %v594_v49, %v593_v47  ;;  %v525_v49 = vld [vmem:[%s6081_s6 + $0x90] sm:$0xff] }
 0x12a   :  { %v5007_v40 = vpack.c.bf16 %v484_v37, %v483_v36  ;;  %v522_v37 = vld [vmem:[%s6081_s6 + $0x78] sm:$0xff] }
 0x12b   :  { %3633 = vmatpush3.bf16.msra.mxu1 %v4900_v6  ;;  %745 = vmatprep.mubr.f32.mxu1 %v558_v43  ;;  %v550_v39 = vrot.slane %v549_v22, 1  ;;  %v584_v43 = vrot.slane %v583_v38, 1 }
 0x12c   :  { %3635 = vmatprep.subr.bf16.mxu1 %v4903_v9 }
 0x12d   :  { %v551_v46 = vadd.f32 %v550_v39, %v549_v22  ;;  %v585_v48 = vadd.f32 %v584_v43, %v583_v38  ;;  %v510_v38 = vld [vmem:[%s6081_s6 + $0x18] sm:$0xff]  ;;  %v515_v39 = vld [vmem:[%s6081_s6 + $0x40] sm:$0xff] }
 0x12f   :  { %3637 = vmatpush3.bf16.msra.mxu1 %v4920_v24 }
 0x130   :  { %3639 = vmatprep.subr.bf16.mxu1 %v4925_v28 }
 0x133   :  { %3641 = vmatpush3.bf16.msra.mxu1 %v4941_v44 }
 0x134   :  { %3643 = vmatprep.subr.bf16.mxu1 %v4944_v45 }
 0x137   :  { %3645 = vmatpush3.bf16.msra.mxu1 %v4959_v54 }
 0x138   :  { %3647 = vmatprep.subr.bf16.mxu1 %v4962_v26 }
 0x13b   :  { %3649 = vmatpush3.bf16.msra.mxu1 %v4977_v5 }
 0x13c   :  { %3651 = vmatprep.subr.bf16.mxu1 %v4980_v10 }
 0x13f   :  { %3653 = vmatpush3.bf16.msra.mxu1 %v4995_v27 }
 0x140   :  { %3655 = vmatprep.subr.bf16.mxu1 %v4998_v34 }
 0x143   :  { %3657 = vmatpush3.bf16.msra.mxu1 %v5007_v40 }
 0x144   :  { %3668 = vmatprep.subr.bf16.mxu1 %v4600_v23 }
 0x146   :  { %746 = vmatmul.mubr.f32.vlgmr.msra.gmra.mrb[4].mxu1 %v551_v46  ;;  %v3748_v46 = vpack.c.bf16 %v515_v39, %v510_v38  ;;  %v1590_v38 = vld [vmem:[%s6085_s7 + $0x190] sm:$0xff]  ;;  %v1591_v39 = vld [vmem:[%s6085_s7 + $0x198] sm:$0xff] }
 0x147   :  { %3670 = vmatpush3.bf16.msra.mxu1 %v4620_v63  ;;  %888 = vmatprep.mubr.f32.mxu1 %v585_v48  ;;  %v520_v48 = vld [vmem:[%s6081_s6 + $0x68] sm:$0xff] }
 0x148   :  { %3672 = vmatprep.subr.bf16.mxu1 %v4626_v2  ;;  %v596_v2 = vrot.slane %v595_v51, 2  ;;  %v3752_v50 = vpack.c.bf16 %v525_v49, %v520_v48  ;;  %v1593_v48 = vld [vmem:[%s6085_s7 + $0x1a8] sm:$0xff] }
 0x14b   :  { %3674 = vmatpush3.bf16.msra.mxu1 %v4646_v8  ;;  %v597_v8 = vadd.f32 %v596_v2, %v595_v51  ;;  %v519_v51 = vld [vmem:[%s6081_s6 + $0x60] sm:$0xff] }
 0x14c   :  { %3676 = vmatprep.subr.bf16.mxu1 %v4652_v11  ;;  %v574_v11 = vadd.f32 %v573_v61, %v572_v17  ;;  %v524_v17 = vld [vmem:[%s6081_s6 + $0x88] sm:$0xff] }
 0x14e   :  { %v5022_v23 = vpop.f32.mrb[2].mxu0  ;;  %v575_v15 = vrot.slane %v574_v11, 2 }
 0x14f   :  { %v560_v59 = vsel %vm559_vm6, %v5022_v23, 0.0  ;;  %3678 = vmatpush3.bf16.msra.mxu1 %v4671_v18  ;;  %v435_v63 = vpop.f32.mrb[3].mxu0  ;;  %v571_v13 = vmul.f32 %v5022_v23, %v5022_v23  ;;  %v598_v18 = vrot.slane %v597_v8, 1 }
 0x150   :  { %v561_v62 = vrot.slane %v560_v59, 4  ;;  %3680 = vmatprep.subr.bf16.mxu1 %v4677_v21  ;;  %v576_v22 = vadd.f32 %v575_v15, %v574_v11 }
 0x151   :  { %v600_v21 = vsel %vm559_vm6, %v571_v13, 0.0  ;;  %v599_v19 = vadd.f32 %v598_v18, %v597_v8 }
 0x152   :  { %v562_v1 = vadd.f32 %v561_v62, %v560_v59  ;;  %v3754_v59 = vpack.c.bf16 %v524_v17, %v519_v51  ;;  %v1576_v51 = vld [vmem:[%s6085_s7 + $0x120] sm:$0xff]  ;;  %v1577_v17 = vld [vmem:[%s6085_s7 + $0x128] sm:$0xff] }
 0x153   :  { %3682 = vmatpush3.bf16.msra.mxu1 %v4696_v29 }
 0x154   :  { %v563_v3 = vrot.slane %v562_v1, 2  ;;  %3684 = vmatprep.subr.bf16.mxu1 %v4699_v31  ;;  %v601_v31 = vrot.slane %v600_v21, 4 }
 0x156   :  { %v564_v14 = vadd.f32 %v563_v3, %v562_v1 }
 0x157   :  { %3686 = vmatpush3.bf16.msra.mxu1 %v4763_v56  ;;  %v569_v56 = vmul.f32 %v4877_v52, %v4877_v52 }
 0x158   :  { %v565_v16 = vrot.slane %v564_v14, 1  ;;  %3688 = vmatprep.subr.bf16.mxu1 %v4772_v57  ;;  %v602_v57 = vadd.f32 %v601_v31, %v600_v21 }
 0x15a   :  { %v566_v29 = vadd.f32 %v565_v16, %v564_v14 }
 0x15b   :  { %3690 = vmatpush3.bf16.msra.mxu1 %v4780_v60  ;;  %v577_v60 = vrot.slane %v576_v22, 1 }
 0x15c   :  { %3381 = vmatmul.mubr.msk.f32.vlgmr.msra.gmra.mrb[4].mxu0 %vm607_vm7, %v566_v29  ;;  %3692 = vmatprep.subr.bf16.mxu1 %v4790_v0  ;;  %v586_v0 = vsel %vm530_vm5, %v569_v56, 0.0 }
 0x15d   :  { %3702 = vmatpush3.bf16.msra.mxu0 %v4881_v55  ;;  %958 = vmatprep.mubr.f32.mxu0 %v599_v19  ;;  %v603_v55 = vrot.slane %v602_v57, 2  ;;  %v578_v36 = vadd.f32 %v577_v60, %v576_v22  ;;  %v529_v22 = vld [vmem:[%s6082_s4] sm:$0x1] }
 0x15e   :  { %3704 = vmatprep.subr.bf16.mxu0 %v4885_v58  ;;  %v587_v58 = vrot.slane %v586_v0, 4 }
 0x15f   :  { %3694 = vmatpush3.bf16.msra.mxu1 %v4798_v4  ;;  %v604_v4 = vadd.f32 %v603_v55, %v602_v57 }
 0x160   :  { %3696 = vmatprep.subr.bf16.mxu1 %v4808_v7  ;;  %v588_v7 = vadd.f32 %v587_v58, %v586_v0 }
 0x161   :  { %3706 = vmatpush3.bf16.msra.mxu0 %v4900_v6 }
 0x162   :  { %3708 = vmatprep.subr.bf16.mxu0 %v4903_v9  ;;  %v589_v6 = vrot.slane %v588_v7, 2 }
 0x163   :  { %3698 = vmatpush3.bf16.msra.mxu1 %v4816_v12  ;;  %v605_v12 = vrot.slane %v604_v4, 1 }
 0x164   :  { %3731 = vmatprep.subr.bf16.mxu1 %v4120_v42  ;;  %v590_v9 = vadd.f32 %v589_v6, %v588_v7 }
 0x165   :  { %3710 = vmatpush3.bf16.msra.mxu0 %v4920_v24 }
 0x166   :  { %889 = vmatmul.mubr.f32.vlgmr.msra.gmra.mrb[6].mxu1 %v578_v36  ;;  %3712 = vmatprep.subr.bf16.mxu0 %v4925_v28  ;;  %v513_v28 = vld [vmem:[%s6081_s6 + $0x30] sm:$0xff] }
 0x167   :  { %3733 = vmatpush3.bf16.msra.mxu1 %v4832_v20  ;;  %3395 = vmatprep.mubr.msk.f32.mxu1 %vm4121_vm4, %v4122_v32  ;;  %v606_v20 = vadd.f32 %v605_v12, %v604_v4  ;;  %v527_v12 = vld [vmem:[%s6083_s2] sm:$0x1] }
 0x168   :  { %3734 = vmatprep.subr.bf16.mxu1 %v4120_v42 }
 0x169   :  { %3714 = vmatpush3.bf16.msra.mxu0 %v4941_v44  ;;  %v507_v44 = vld [vmem:[%s6081_s6] sm:$0xff] }
 0x16a   :  { %3716 = vmatprep.subr.bf16.mxu0 %v4944_v45 }
 0x16b   :  { %3736 = vmatpush3.bf16.msra.mxu1 %v4842_v25  ;;  %v591_v25 = vrot.slane %v590_v9, 1 }
 0x16c   :  { %3737 = vmatprep.subr.bf16.mxu1 %v4120_v42 }
 0x16d   :  { %3718 = vmatpush3.bf16.msra.mxu0 %v4959_v54  ;;  %v592_v24 = vadd.f32 %v591_v25, %v590_v9  ;;  %v512_v54 = vld [vmem:[%s6081_s6 + $0x28] sm:$0xff]  ;;  %v528_v9 = vld [vmem:[%s6084_s3] sm:$0x1] }
 0x16e   :  { %3720 = vmatprep.subr.bf16.mxu0 %v4962_v26  ;;  %v518_v26 = vld [vmem:[%s6081_s6 + $0x58] sm:$0xff] }
 0x16f   :  { %3739 = vmatpush3.bf16.msra.mxu1 %v4852_v30  ;;  %v508_v30 = vld [vmem:[%s6081_s6 + $0x8] sm:$0xff] }
 0x170   :  { %v5079_v45 = vpack.c.bf16 %v513_v28, %v508_v30  ;;  %3771 = vmatprep.subr.bf16.mxu1 %v3748_v46  ;;  %v511_v30 = vld [vmem:[%s6081_s6 + $0x20] sm:$0xff]  ;;  %v516_v28 = vld [vmem:[%s6081_s6 + $0x48] sm:$0xff] }
 0x171   :  { %3722 = vmatpush3.bf16.msra.mxu0 %v4977_v5  ;;  %v523_v5 = vld [vmem:[%s6081_s6 + $0x80] sm:$0xff] }
 0x172   :  { %3396 = vmatmul.mubr.msk.f32.vlgmr.msra.gmra.mrb[8].mxu1 %vm607_vm7, %v606_v20  ;;  %3724 = vmatprep.subr.bf16.mxu0 %v4980_v10  ;;  %v5090_v10 = vpack.c.bf16 %v512_v54, %v507_v44  ;;  %v3757_v44 = vpack.c.bf16 %v516_v28, %v511_v30  ;;  %v521_v54 = vld [vmem:[%s6081_s6 + $0x70] sm:$0xff]  ;;  %v1545_v30 = vld [vmem:[%s6085_s7 + $0x28] sm:$0xff] }
 0x173   :  { %1398 = vmatprep.mubr.f32.mxu1 %v4122_v32 }
 0x175   :  { %3726 = vmatpush3.bf16.msra.mxu0 %v4995_v27  ;;  %v5092_v27 = vpack.c.bf16 %v523_v5, %v518_v26  ;;  %v526_v26 = vld [vmem:[%s6081_s6 + $0x98] sm:$0xff] }
 0x176   :  { %3728 = vmatprep.subr.bf16.mxu0 %v4998_v34  ;;  %v517_v34 = vld [vmem:[%s6081_s6 + $0x50] sm:$0xff]  ;;  %v3760_v5 = vpack.c.bf16 %v526_v26, %v521_v54  ;;  %v1600_v54 = vld [vmem:[%s6085_s7 + $0x1e0] sm:$0xff]  ;;  %v1601_v26 = vld [vmem:[%s6085_s7 + $0x1e8] sm:$0xff] }
 0x177   :  { %v5114_v43 = vpack.c.bf16 %v522_v37, %v517_v34  ;;  %v1588_v34 = vld [vmem:[%s6085_s7 + $0x180] sm:$0xff]  ;;  %v1573_v37 = vld [vmem:[%s6085_s7 + $0x108] sm:$0xff] }
 0x179   :  { %3730 = vmatpush3.bf16.msra.mxu0 %v5007_v40  ;;  %v509_v40 = vld [vmem:[%s6081_s6 + $0x10] sm:$0xff] }
 0x17a   :  { %3741 = vmatprep.subr.bf16.mxu0 %v5079_v45  ;;  %v3750_v47 = vpack.c.bf16 %v514_v41, %v509_v40  ;;  %v3820_v41 = vpack.c.bf16 %v1591_v39, %v1590_v38  ;;  %v1546_v38 = vld [vmem:[%s6085_s7 + $0x30] sm:$0xff]  ;;  %v1547_v39 = vld [vmem:[%s6085_s7 + $0x38] sm:$0xff] }
 0x17c   :  { %959 = vmatmul.mubr.f32.vlgmr.msra.gmra.mrb[6].mxu0 %v592_v24  ;;  %3773 = vmatpush1.bf16.msra.mxu1 %v3750_v47 }
 0x17d   :  { %1112 = vmatprep.mubr.f32.mxu0 %v4122_v32  ;;  %3743 = vmatpush1.bf16.msra.mxu0 %v5090_v10 }
 0x17e   :  { %3745 = vmatprep.subr.bf16.mxu0 %v5092_v27  ;;  %3775 = vmatprep.subr.bf16.mxu1 %v3752_v50 }
 0x180   :  { %3777 = vmatpush1.bf16.msra.mxu1 %v3754_v59 }
 0x181   :  { %3747 = vmatpush1.bf16.msra.mxu0 %v5114_v43 }
 0x182   :  { %3749 = vmatprep.subr.bf16.mxu0 %v3748_v46  ;;  %v1575_v46 = vld [vmem:[%s6085_s7 + $0x118] sm:$0xff] }
 0x1f9   :  { %v3054_v63 = vpop.f32.mrb[2].mxu1 }
 0x1fa   :  { %v3055_v2 = vpop.f32.mrb[3].mxu1 }
 0x1fb   :  { %v3056_v61 = vadd.f32 %v3055_v2, %v3054_v63  ;;  %v1595_v63 = vld [vmem:[%s6085_s7 + $0x1b8] sm:$0xff]  ;;  %v3826_v2 = vpack.c.bf16 %v1577_v17, %v1576_v51 }
 0x1fc   :  { %v1587_v17 = vld [vmem:[%s6085_s7 + $0x178] sm:$0xff] }
 0x219   :  { %v3089_v62 = vpop.f32.mrb[4].mxu1 }
 0x21a   :  { %v3090_v1 = vpop.f32.mrb[5].mxu1 }
 0x21b   :  { %v3091_v8 = vadd.f32 %v3090_v1, %v3089_v62  ;;  %v1556_v62 = vld [vmem:[%s6085_s7 + $0x80] sm:$0xff]  ;;  %v1557_v1 = vld [vmem:[%s6085_s7 + $0x88] sm:$0xff] }
 0x21d   :  { %v748_v11 = vadd.f32 %v3091_v8, %v3056_v61  ;;  %v1578_v8 = vld [vmem:[%s6085_s7 + $0x130] sm:$0xff] }
 0x22f   :  { %v817_v3 = vpop.f32.mrb[4].mxu0 }
 0x230   :  { %v818_v13 = vadd.f32 %v817_v3, %v748_v11  ;;  %v3382_v14 = vpop.f32.mrb[5].mxu0  ;;  %v3784_v11 = vpack.c.bf16 %v1557_v1, %v1556_v62  ;;  %v1579_v3 = vld [vmem:[%s6085_s7 + $0x138] sm:$0xff]  ;;  %v1566_v62 = vld [vmem:[%s6085_s7 + $0xd0] sm:$0xff] }
 0x231   :  { %v1541_v14 = vld [vmem:[%s6085_s7 + $0x8] sm:$0xff]  ;;  %v1567_v1 = vld [vmem:[%s6085_s7 + $0xd8] sm:$0xff] }
 0x232   :  { %v1034_v57 = vmul.f32 %v818_v13, %v529_v22  ;;  %v1540_v13 = vld [vmem:[%s6085_s7] sm:$0xff]  ;;  %3785 = vmatprep.subr.bf16.mxu1 %v3784_v11  ;;  %v1550_v11 = vld [vmem:[%s6085_s7 + $0x50] sm:$0xff] }
 0x234   :  { %v1036_v55 = vmul.f32 %v1034_v57, %v1034_v57 }
 0x239   :  { %v3131_v18 = vpop.f32.mrb[6].mxu1 }
 0x23a   :  { %v3132_v15 = vpop.f32.mrb[7].mxu1 }
 0x23b   :  { %v3133_v16 = vadd.f32 %v3132_v15, %v3131_v18  ;;  %v3830_v18 = vpack.c.bf16 %v1579_v3, %v1578_v8  ;;  %v3786_v15 = vpack.c.bf16 %v1541_v14, %v1540_v13  ;;  %v3804_v8 = vpack.c.bf16 %v1567_v1, %v1566_v62  ;;  %v1551_v3 = vld [vmem:[%s6085_s7 + $0x58] sm:$0xff]  ;;  %v1568_v14 = vld [vmem:[%s6085_s7 + $0xe0] sm:$0xff] }
 0x23c   :  { %v3806_v13 = vpack.c.bf16 %v1551_v3, %v1550_v11 }
 0x245   :  { %v1030_v21 = vpop.f32.mrb[8].mxu1 }
 0x246   :  { %v3397_v29 = vpop.f32.mrb[9].mxu1 }
 0x24f   :  { %v3166_v19 = vpop.f32.mrb[6].mxu0 }
 0x250   :  { %v3167_v31 = vpop.f32.mrb[7].mxu0 }
 0x251   :  { %v3168_v56 = vadd.f32 %v3167_v31, %v3166_v19  ;;  %v1558_v19 = vld [vmem:[%s6085_s7 + $0x90] sm:$0xff]  ;;  %v1580_v31 = vld [vmem:[%s6085_s7 + $0x140] sm:$0xff] }
 0x253   :  { %v961_v60 = vadd.f32 %v3168_v56, %v3133_v16  ;;  %v1596_v16 = vld [vmem:[%s6085_s7 + $0x1c0] sm:$0xff] }
 0x255   :  { %v1031_v0 = vadd.f32 %v1030_v21, %v961_v60  ;;  %v1597_v21 = vld [vmem:[%s6085_s7 + $0x1c8] sm:$0xff]  ;;  %v1542_v60 = vld [vmem:[%s6085_s7 + $0x10] sm:$0xff] }
 0x256   :  { %v3832_v29 = vpack.c.bf16 %v1597_v21, %v1596_v16  ;;  %v1552_v16 = vld [vmem:[%s6085_s7 + $0x60] sm:$0xff]  ;;  %v1553_v21 = vld [vmem:[%s6085_s7 + $0x68] sm:$0xff] }
 0x257   :  { %v1035_v36 = vmul.f32 %v1031_v0, %v529_v22  ;;  %v1559_v22 = vld [vmem:[%s6085_s7 + $0x98] sm:$0xff] }
 0x258   :  { %v3788_v56 = vpack.c.bf16 %v1559_v22, %v1558_v19  ;;  %v1543_v0 = vld [vmem:[%s6085_s7 + $0x18] sm:$0xff]  ;;  %v1570_v19 = vld [vmem:[%s6085_s7 + $0xf0] sm:$0xff] }
 0x259   :  { %v1037_v58 = vsub.f32 %v1035_v36, %v1036_v55  ;;  %v3790_v36 = vpack.c.bf16 %v1543_v0, %v1542_v60  ;;  %v1571_v22 = vld [vmem:[%s6085_s7 + $0xf8] sm:$0xff]  ;;  %v1475_v0 = vlaneseq }
 0x25b   :  { %v1038_v4 = vmax.f32 %v1037_v58, 0.0  ;;  %v1598_v58 = vld [vmem:[%s6085_s7 + $0x1d0] sm:$0xff] }
 0x25d   :  { %v1039_v7 = vadd.f32 1e-05, %v1038_v4  ;;  %v1599_v4 = vld [vmem:[%s6085_s7 + $0x1d8] sm:$0xff] }
 0x25f   :  { %4111 = vrsqrt.f32 %v1039_v7  ;;  %v3836_v7 = vpack.c.bf16 %v1599_v4, %v1598_v58 }
 0x269   :  { %v4112_v6 = vpop.eup %4111 }
 0x26a   :  { %v1041_v20 = vmul.f32 %v4112_v6, %v527_v12  ;;  %v1560_v12 = vld [vmem:[%s6085_s7 + $0xa0] sm:$0xff]  ;;  %v1561_v6 = vld [vmem:[%s6085_s7 + $0xa8] sm:$0xff] }
 0x26c   :  { %3004 = vmatmul.mubr.msk.f32.vlgmr.msra.gmra.mrb[8].mxu0 %vm1044_vm8, %v1041_v20  ;;  %v1042_v25 = vmul.f32 %v1041_v20, %v1034_v57  ;;  %v1581_v57 = vld [vmem:[%s6085_s7 + $0x148] sm:$0xff] }
 0x26d   :  { %3751 = vmatpush1.bf16.msra.mxu0 %v3750_v47  ;;  %1183 = vmatprep.mubr.f32.mxu0 %v4122_v32  ;;  %v1592_v47 = vld [vmem:[%s6085_s7 + $0x1a0] sm:$0xff]  ;;  %v3834_v55 = vpack.c.bf16 %v1581_v57, %v1580_v31  ;;  %v3812_v31 = vpack.c.bf16 %v1571_v22, %v1570_v19  ;;  %v1555_v57 = vld [vmem:[%s6085_s7 + $0x78] sm:$0xff] }
 0x26e   :  { %3753 = vmatprep.subr.bf16.mxu0 %v3752_v50  ;;  %v1043_v24 = vsub.f32 %v528_v9, %v1042_v25  ;;  %v3824_v50 = vpack.c.bf16 %v1593_v48, %v1592_v47  ;;  %v3792_v9 = vpack.c.bf16 %v1561_v6, %v1560_v12  ;;  %v1583_v25 = vld [vmem:[%s6085_s7 + $0x158] sm:$0xff]  ;;  %v1564_v48 = vld [vmem:[%s6085_s7 + $0xc0] sm:$0xff] }
 0x26f   :  { %v1836_v19 = vld [vmem:[%s6086_s9 + $0x18] sm:$0xff] }
 0x270   :  { %3008 = vmatmul.mubr.msk.f32.vlgmr.msra.gmra.mrb[10].mxu1 %vm1044_vm8, %v1043_v24 }
 0x271   :  { %3755 = vmatpush1.bf16.msra.mxu0 %v3754_v59  ;;  %v1594_v59 = vld [vmem:[%s6085_s7 + $0x1b0] sm:$0xff]  ;;  %3787 = vmatpush3.bf16.msra.mxu1 %v3786_v15 }
 0x272   :  { %3756 = vmatprep.subr.bf16.mxu0 %v4120_v42  ;;  %v3828_v61 = vpack.c.bf16 %v1595_v63, %v1594_v59  ;;  %3789 = vmatprep.subr.bf16.mxu1 %v3788_v56  ;;  %v1548_v59 = vld [vmem:[%s6085_s7 + $0x40] sm:$0xff]  ;;  %v1549_v63 = vld [vmem:[%s6085_s7 + $0x48] sm:$0xff]  ;;  %v1554_v56 = vld [vmem:[%s6085_s7 + $0x70] sm:$0xff] }
 0x273   :  { %v3814_v60 = vpack.c.bf16 %v1555_v57, %v1554_v56  ;;  %v1833_v56 = vld [vmem:[%s6086_s9] sm:$0xff] }
 0x274   :  { %3005 = vmatmul.mubr.msk.f32.vlgmr.msra.gmra.mrb[10].mxu0 %vm1044_vm8, %v1041_v20  ;;  %v1837_v57 = vld [vmem:[%s6086_s9 + $0x20] sm:$0xff] }
 0x275   :  { %3758 = vmatpush3.bf16.msra.mxu0 %v3757_v44  ;;  %3406 = vmatprep.mubr.msk.f32.mxu0 %vm4121_vm4, %v4122_v32 }
 0x276   :  { %3759 = vmatprep.subr.bf16.mxu0 %v4120_v42  ;;  %3791 = vmatpush3.bf16.msra.mxu1 %v3790_v36 }
 0x277   :  { %3793 = vmatprep.subr.bf16.mxu1 %v3792_v9 }
 0x279   :  { %3761 = vmatpush3.bf16.msra.mxu0 %v3760_v5 }
 0x27a   :  { %3763 = vmatprep.subr.bf16.mxu0 %v5079_v45  ;;  %v1589_v45 = vld [vmem:[%s6085_s7 + $0x188] sm:$0xff] }
 0x27c   :  { %3407 = vmatmul.mubr.msk.f32.vlgmr.msra.gmra.mrb[12].mxu0 %vm1044_vm8, %v1041_v20  ;;  %v1582_v20 = vld [vmem:[%s6085_s7 + $0x150] sm:$0xff] }
 0x27d   :  { %3765 = vmatpush1.bf16.msra.mxu0 %v5090_v10  ;;  %1327 = vmatprep.mubr.f32.mxu0 %v4122_v32  ;;  %v3816_v10 = vpack.c.bf16 %v1589_v45, %v1588_v34  ;;  %v3838_v28 = vpack.c.bf16 %v1583_v25, %v1582_v20  ;;  %v1562_v34 = vld [vmem:[%s6085_s7 + $0xb0] sm:$0xff]  ;;  %v1563_v45 = vld [vmem:[%s6085_s7 + $0xb8] sm:$0xff] }
 0x27e   :  { %3767 = vmatprep.subr.bf16.mxu0 %v5092_v27  ;;  %v1572_v27 = vld [vmem:[%s6085_s7 + $0x100] sm:$0xff] }
 0x27f   :  { %v3818_v40 = vpack.c.bf16 %v1573_v37, %v1572_v27  ;;  %v3796_v27 = vpack.c.bf16 %v1563_v45, %v1562_v34  ;;  %v1585_v37 = vld [vmem:[%s6085_s7 + $0x168] sm:$0xff] }
 0x281   :  { %3769 = vmatpush1.bf16.msra.mxu0 %v5114_v43  ;;  %v1574_v43 = vld [vmem:[%s6085_s7 + $0x110] sm:$0xff] }
 0x282   :  { %3778 = vmatprep.subr.bf16.mxu0 %v4120_v42  ;;  %v3822_v49 = vpack.c.bf16 %v1575_v46, %v1574_v43  ;;  %v1602_v43 = vld [vmem:[%s6085_s7 + $0x1f0] sm:$0xff]  ;;  %v1603_v46 = vld [vmem:[%s6085_s7 + $0x1f8] sm:$0xff] }
 0x283   :  { %v3844_v47 = vpack.c.bf16 %v1603_v46, %v1602_v43 }
 0x284   :  { %3007 = vmatmul.mubr.msk.f32.vlgmr.msra.gmra.mrb[14].mxu0 %vm1044_vm8, %v1043_v24 }
 0x285   :  { %3780 = vmatpush3.bf16.msra.mxu0 %v3757_v44  ;;  %3417 = vmatprep.mubr.msk.f32.mxu0 %vm4121_vm4, %v4122_v32 }
 0x286   :  { %3781 = vmatprep.subr.bf16.mxu0 %v4120_v42 }
 0x289   :  { %3783 = vmatpush3.bf16.msra.mxu0 %v3760_v5  ;;  %v3840_v5 = vpack.c.bf16 %v1601_v26, %v1600_v54 }
 0x28a   :  { %3817 = vmatprep.subr.bf16.mxu0 %v3816_v10  ;;  %v1584_v10 = vld [vmem:[%s6085_s7 + $0x160] sm:$0xff] }
 0x28c   :  { %3418 = vmatmul.mubr.msk.f32.vlgmr.msra.gmra.mrb[16].mxu0 %vm1044_vm8, %v1043_v24  ;;  %v1544_v24 = vld [vmem:[%s6085_s7 + $0x20] sm:$0xff] }
 0x28d   :  { %3819 = vmatpush3.bf16.msra.mxu0 %v3818_v40  ;;  %v3794_v44 = vpack.c.bf16 %v1545_v30, %v1544_v24  ;;  %v3842_v40 = vpack.c.bf16 %v1585_v37, %v1584_v10 }
 0x28e   :  { %3821 = vmatprep.subr.bf16.mxu0 %v3820_v41  ;;  %v3798_v41 = vpack.c.bf16 %v1547_v39, %v1546_v38 }
 0x28f   :  { %3795 = vmatpush3.bf16.msra.mxu1 %v3794_v44 }
 0x290   :  { %3797 = vmatprep.subr.bf16.mxu1 %v3796_v27 }
 0x291   :  { %3823 = vmatpush3.bf16.msra.mxu0 %v3822_v49  ;;  %v1565_v49 = vld [vmem:[%s6085_s7 + $0xc8] sm:$0xff] }
 0x292   :  { %3825 = vmatprep.subr.bf16.mxu0 %v3824_v50  ;;  %v1586_v50 = vld [vmem:[%s6085_s7 + $0x170] sm:$0xff]  ;;  %v3800_v51 = vpack.c.bf16 %v1565_v49, %v1564_v48  ;;  %v1604_v49 = vld [vmem:[%s6085_s7 + $0x200] sm:$0xff] }
 0x293   :  { %3799 = vmatpush3.bf16.msra.mxu1 %v3798_v41 }
 0x294   :  { %3801 = vmatprep.subr.bf16.mxu1 %v3800_v51 }
 0x295   :  { %3827 = vmatpush3.bf16.msra.mxu0 %v3826_v2  ;;  %v3846_v2 = vpack.c.bf16 %v1587_v17, %v1586_v50 }
 0x296   :  { %3829 = vmatprep.subr.bf16.mxu0 %v3828_v61  ;;  %v3802_v61 = vpack.c.bf16 %v1549_v63, %v1548_v59 }
 0x298   :  { %3803 = vmatpush3.bf16.msra.mxu1 %v3802_v61  ;;  %v1607_v61 = vld [vmem:[%s6085_s7 + $0x218] sm:$0xff] }
 0x299   :  { %3831 = vmatpush3.bf16.msra.mxu0 %v3830_v18  ;;  %3805 = vmatprep.subr.bf16.mxu1 %v3804_v8  ;;  %v1569_v18 = vld [vmem:[%s6085_s7 + $0xe8] sm:$0xff] }
 0x29a   :  { %3833 = vmatprep.subr.bf16.mxu0 %v3832_v29  ;;  %v3808_v15 = vpack.c.bf16 %v1569_v18, %v1568_v14  ;;  %v3810_v29 = vpack.c.bf16 %v1553_v21, %v1552_v16  ;;  %v1609_v14 = vld [vmem:[%s6085_s7 + $0x228] sm:$0xff] }
 0x29b   :  { %v1834_v21 = vld [vmem:[%s6086_s9 + $0x8] sm:$0xff] }
 0x29c   :  { %3807 = vmatpush3.bf16.msra.mxu1 %v3806_v13  ;;  %v1608_v13 = vld [vmem:[%s6085_s7 + $0x220] sm:$0xff] }
 0x29d   :  { %3835 = vmatpush3.bf16.msra.mxu0 %v3834_v55  ;;  %3809 = vmatprep.subr.bf16.mxu1 %v3808_v15  ;;  %v1476_v55 = vshrl.u32 %v1475_v0, 7  ;;  %v3855_v18 = vpack.c.bf16 %v1609_v14, %v1608_v13  ;;  %v3859_v0 = vpack.c.bf16 %v1837_v57, %v1833_v56  ;;  %v2029_v57 = vld [vmem:[%s6087_s12 + $0x90] sm:$0xff] }
 0x29e   :  { %3837 = vmatprep.subr.bf16.mxu0 %v3836_v7 }
 0x29f   :  { %v5364_v36 = vsub.s32 0, %v1476_v55  ;;  %v1835_v55 = vld [vmem:[%s6086_s9 + $0x10] sm:$0xff] }
 0x2a0   :  { %3811 = vmatpush3.bf16.msra.mxu1 %v3810_v29  ;;  %v1838_v29 = vld [vmem:[%s6086_s9 + $0x28] sm:$0xff] }
 0x2a1   :  { %3839 = vmatpush3.bf16.msra.mxu0 %v3838_v28  ;;  %3813 = vmatprep.subr.bf16.mxu1 %v3812_v31  ;;  %v3857_v22 = vpack.c.bf16 %v1838_v29, %v1834_v21  ;;  %v1840_v31 = vld [vmem:[%s6086_s9 + $0x38] sm:$0xff]  ;;  %v2044_v29 = vld [vmem:[%s6087_s12 + $0x108] sm:$0xff] }
 0x2a2   :  { %3841 = vmatprep.subr.bf16.mxu0 %v3840_v5 }
 0x2a4   :  { %3815 = vmatpush3.bf16.msra.mxu1 %v3814_v60  ;;  %v3873_v60 = vpack.c.bf16 %v1840_v31, %v1836_v19  ;;  %v2011_v19 = vld [vmem:[%s6087_s12] sm:$0xff] }
 0x2a5   :  { %3843 = vmatpush3.bf16.msra.mxu0 %v3842_v40  ;;  %3848 = vmatprep.subr.bf16.mxu1 %v4120_v42 }
 0x2a6   :  { %3845 = vmatprep.subr.bf16.mxu0 %v3844_v47 }
 0x2a9   :  { %3847 = vmatpush3.bf16.msra.mxu0 %v3846_v2  ;;  %v1606_v2 = vld [vmem:[%s6085_s7 + $0x210] sm:$0xff] }
 0x2aa   :  { %v3852_v3 = vpack.c.bf16 %v1607_v61, %v1606_v2  ;;  %3858 = vmatprep.subr.bf16.mxu0 %v3857_v22  ;;  %v2028_v2 = vld [vmem:[%s6087_s12 + $0x88] sm:$0xff] }
 0x2ab   :  { %v2012_v22 = vld [vmem:[%s6087_s12 + $0x8] sm:$0xff] }
 0x33f   :  { %v1114_v58 = vpop.f32.mrb[8].mxu0 }
 0x340   :  { %v1478_v4 = vrot.slane %v1114_v58, %v5364_v36  ;;  %v1116_v7 = vpop.f32.mrb[9].mxu0  ;;  %v1839_v58 = vld [vmem:[%s6086_s9 + $0x30] sm:$0xff] }
 0x341   :  { %v1482_v12 = vrot.slane %v1116_v7, %v5364_v36  ;;  %v1842_v7 = vld [vmem:[%s6086_s9 + $0x48] sm:$0xff] }
 0x342   :  { %v1495_v6 = vmul.f32 %v1478_v4, %v4857_v33  ;;  %v3875_v4 = vpack.c.bf16 %v1839_v58, %v1835_v55  ;;  %v2045_v58 = vld [vmem:[%s6087_s12 + $0x110] sm:$0xff] }
 0x343   :  { %v1496_v20 = vmul.f32 %v1482_v12, %v4861_v35  ;;  %v1400_v9 = vpop.f32.mrb[10].mxu1  ;;  %v1846_v12 = vld [vmem:[%s6086_s9 + $0x68] sm:$0xff] }
 0x344   :  { %v1402_v25 = vpop.f32.mrb[11].mxu1  ;;  %v1511_v54 = vrot.slane %v1400_v9, %v5364_v36  ;;  %v1848_v9 = vld [vmem:[%s6086_s9 + $0x78] sm:$0xff] }
 0x345   :  { %v1515_v5 = vrot.slane %v1402_v25, %v5364_v36  ;;  %v1841_v25 = vld [vmem:[%s6086_s9 + $0x40] sm:$0xff] }
 0x347   :  { %v1185_v24 = vpop.f32.mrb[10].mxu0 }
 0x348   :  { %v1486_v30 = vrot.slane %v1185_v24, %v5364_v36  ;;  %v1187_v28 = vpop.f32.mrb[11].mxu0  ;;  %v1845_v24 = vld [vmem:[%s6086_s9 + $0x60] sm:$0xff] }
 0x349   :  { %v1490_v44 = vrot.slane %v1187_v28, %v5364_v36  ;;  %v3863_v28 = vpack.c.bf16 %v1845_v24, %v1841_v25  ;;  %v2031_v25 = vld [vmem:[%s6087_s12 + $0xa0] sm:$0xff]  ;;  %v2032_v24 = vld [vmem:[%s6087_s12 + $0xa8] sm:$0xff] }
 0x34a   :  { %v1497_v26 = vmul.f32 %v1486_v30, %v4877_v52 }
 0x34b   :  { %v1498_v34 = vmul.f32 %v1490_v44, %v4879_v53  ;;  %v1843_v44 = vld [vmem:[%s6086_s9 + $0x50] sm:$0xff] }
 0x34c   :  { %v1522_v45 = vadd.f32 %v1511_v54, %v1497_v26  ;;  %v1847_v54 = vld [vmem:[%s6086_s9 + $0x70] sm:$0xff]  ;;  %v1850_v26 = vld [vmem:[%s6086_s9 + $0x88] sm:$0xff] }
 0x34d   :  { %v1523_v33 = vadd.f32 %v1515_v5, %v1498_v34  ;;  %v3879_v5 = vpack.c.bf16 %v1847_v54, %v1843_v44  ;;  %v1854_v34 = vld [vmem:[%s6086_s9 + $0xa8] sm:$0xff] }
 0x34e   :  { %v1532_v10 = vmul.f32 0.2, %v1522_v45  ;;  %vm1527_vm10 = vcmp.gt.f32.partialorder %v1522_v45, 0.0  ;;  %v2048_v54 = vld [vmem:[%s6087_s12 + $0x128] sm:$0xff] }
 0x34f   :  { %v1256_v35 = vpop.f32.mrb[12].mxu0  ;;  %vm1528_vm9 = vcmp.gt.f32.partialorder %v1523_v33, 0.0  ;;  %v1533_v27 = vmul.f32 0.2, %v1523_v33 }
 0x350   :  { %v1494_v37 = vrot.slane %v1256_v35, %v5364_v36  ;;  %v3408_v38 = vpop.f32.mrb[13].mxu0  ;;  %v1537_v41 = vsel %vm1527_vm10, %v1522_v45, %v1532_v10  ;;  %v1852_v45 = vld [vmem:[%s6086_s9 + $0x98] sm:$0xff]  ;;  %v3865_v10 = vpack.c.bf16 %v1854_v34, %v1850_v26  ;;  %v5571_v26 = vpack.c.bf16 %v2032_v24, %v2031_v25  ;;  %v2016_v34 = vld [vmem:[%s6087_s12 + $0x28] sm:$0xff]  ;;  %v2061_v24 = vld [vmem:[%s6087_s12 + $0x190] sm:$0xff] }
 0x351   :  { %v1538_v39 = vsel %vm1528_vm9, %v1523_v33, %v1533_v27  ;;  %v1856_v33 = vld [vmem:[%s6086_s9 + $0xb8] sm:$0xff]  ;;  %v1849_v27 = vld [vmem:[%s6086_s9 + $0x80] sm:$0xff]  ;;  %v1851_v38 = vld [vmem:[%s6086_s9 + $0x90] sm:$0xff] }
 0x352   :  { %v1499_v40 = vmul.f32 %v1494_v37, %v5022_v23  ;;  %1754 = vmatprep.mubr.f32.mxu0 %v1538_v39  ;;  %v1605_v23 = vld [vmem:[%s6085_s7 + $0x208] sm:$0xff]  ;;  %v3881_v35 = vpack.c.bf16 %v1856_v33, %v1852_v45  ;;  %v1853_v37 = vld [vmem:[%s6086_s9 + $0xa0] sm:$0xff]  ;;  %v2033_v45 = vld [vmem:[%s6087_s12 + $0xb0] sm:$0xff] }
 0x353   :  { %1755 = vmatmul.mubr.f32.vlgmr.msra.gmra.mrb[18].mxu0 %v1537_v41  ;;  %v3849_v17 = vpack.c.bf16 %v1605_v23, %v1604_v49  ;;  %v3867_v39 = vpack.c.bf16 %v1853_v37, %v1849_v27  ;;  %v1861_v49 = vld [vmem:[%s6086_s9 + $0xe0] sm:$0xff]  ;;  %v2034_v33 = vld [vmem:[%s6087_s12 + $0xb8] sm:$0xff] }
 0x354   :  { %1933 = vmatprep.mubr.f32.mxu0 %v4122_v32  ;;  %3860 = vmatpush1.bf16.msra.mxu0 %v3859_v0  ;;  %v2050_v37 = vld [vmem:[%s6087_s12 + $0x138] sm:$0xff] }
 0x355   :  { %v2026_v25 = vld [vmem:[%s6087_s12 + $0x78] sm:$0xff] }
 0x357   :  { %v1329_v52 = vpop.f32.mrb[14].mxu0 }
 0x358   :  { %v1503_v53 = vrot.slane %v1329_v52, %v5364_v36  ;;  %v1331_v43 = vpop.f32.mrb[15].mxu0  ;;  %v1858_v52 = vld [vmem:[%s6086_s9 + $0xc8] sm:$0xff] }
 0x359   :  { %v1507_v46 = vrot.slane %v1331_v43, %v5364_v36  ;;  %v1860_v43 = vld [vmem:[%s6086_s9 + $0xd8] sm:$0xff] }
 0x35a   :  { %v1520_v47 = vadd.f32 %v1503_v53, %v1495_v6  ;;  %v1844_v6 = vld [vmem:[%s6086_s9 + $0x58] sm:$0xff]  ;;  %v1862_v53 = vld [vmem:[%s6086_s9 + $0xe8] sm:$0xff] }
 0x35b   :  { %v1521_v48 = vadd.f32 %v1507_v46, %v1496_v20  ;;  %v3861_v20 = vpack.c.bf16 %v1846_v12, %v1842_v7  ;;  %v3877_v30 = vpack.c.bf16 %v1848_v9, %v1844_v6  ;;  %v3869_v46 = vpack.c.bf16 %v1862_v53, %v1858_v52  ;;  %v2046_v7 = vld [vmem:[%s6087_s12 + $0x118] sm:$0xff]  ;;  %v2013_v6 = vld [vmem:[%s6087_s12 + $0x10] sm:$0xff]  ;;  %v2036_v52 = vld [vmem:[%s6087_s12 + $0xc8] sm:$0xff] }
 0x35c   :  { %v1530_v50 = vmul.f32 0.2, %v1520_v47  ;;  %vm1525_vm12 = vcmp.gt.f32.partialorder %v1520_v47, 0.0 }
 0x35d   :  { %vm1526_vm11 = vcmp.gt.f32.partialorder %v1521_v48, 0.0  ;;  %v1531_v51 = vmul.f32 0.2, %v1521_v48  ;;  %3862 = vmatprep.subr.bf16.mxu0 %v3861_v20  ;;  %v2014_v20 = vld [vmem:[%s6087_s12 + $0x18] sm:$0xff] }
 0x35e   :  { %v1535_v8 = vsel %vm1525_vm12, %v1520_v47, %v1530_v50  ;;  %3864 = vmatpush1.bf16.msra.mxu0 %v3863_v28  ;;  %v1864_v47 = vld [vmem:[%s6086_s9 + $0xf8] sm:$0xff]  ;;  %v2047_v28 = vld [vmem:[%s6087_s12 + $0x120] sm:$0xff]  ;;  %v5564_v44 = vpack.c.bf16 %v2014_v20, %v2013_v6 }
 0x35f   :  { %v1471_v59 = vpop.f32.mrb[16].mxu0  ;;  %v1536_v63 = vsel %vm1526_vm11, %v1521_v48, %v1531_v51  ;;  %3866 = vmatprep.subr.bf16.mxu0 %v3865_v10  ;;  %v1857_v48 = vld [vmem:[%s6086_s9 + $0xc0] sm:$0xff]  ;;  %v3885_v23 = vpack.c.bf16 %v1864_v47, %v1860_v43  ;;  %v1859_v51 = vld [vmem:[%s6086_s9 + $0xd0] sm:$0xff]  ;;  %v5586_v10 = vpack.c.bf16 %v2048_v54, %v2047_v28  ;;  %v2052_v47 = vld [vmem:[%s6087_s12 + $0x148] sm:$0xff] }
 0x360   :  { %v1519_v62 = vrot.slane %v1471_v59, %v5364_v36  ;;  %v3419_v1 = vpop.f32.mrb[17].mxu0  ;;  %1684 = vmatprep.mubr.f32.mxu1 %v1536_v63  ;;  %v3871_v50 = vpack.c.bf16 %v1861_v49, %v1857_v48  ;;  %v2027_v63 = vld [vmem:[%s6087_s12 + $0x80] sm:$0xff]  ;;  %v2042_v6 = vld [vmem:[%s6087_s12 + $0xf8] sm:$0xff] }
 0x361   :  { %1685 = vmatmul.mubr.f32.vlgmr.msra.gmra.mrb[12].mxu1 %v1535_v8  ;;  %v5509_v61 = vpack.c.bf16 %v2028_v2, %v2027_v63  ;;  %v2055_v63 = vld [vmem:[%s6087_s12 + $0x160] sm:$0xff]  ;;  %v2062_v54 = vld [vmem:[%s6087_s12 + $0x198] sm:$0xff] }
 0x362   :  { %v1524_v11 = vadd.f32 %v1519_v62, %v1499_v40  ;;  %3850 = vmatpush3.bf16.msra.mxu1 %v3849_v17  ;;  %3432 = vmatprep.mubr.msk.f32.mxu1 %vm4121_vm4, %v4122_v32  ;;  %v1855_v40 = vld [vmem:[%s6086_s9 + $0xb0] sm:$0xff] }
 0x363   :  { %3851 = vmatprep.subr.bf16.mxu1 %v4120_v42  ;;  %v3883_v41 = vpack.c.bf16 %v1855_v40, %v1851_v38  ;;  %3868 = vmatpush1.bf16.msra.mxu0 %v3867_v39  ;;  %v1863_v17 = vld [vmem:[%s6086_s9 + $0xf0] sm:$0xff]  ;;  %v5599_v38 = vpack.c.bf16 %v2034_v33, %v2033_v45  ;;  %v2018_v40 = vld [vmem:[%s6087_s12 + $0x38] sm:$0xff] }
 0x364   :  { %v1534_v15 = vmul.f32 0.2, %v1524_v11  ;;  %vm1529_vm13 = vcmp.gt.f32.partialorder %v1524_v11, 0.0  ;;  %3870 = vmatprep.subr.bf16.mxu0 %v3869_v46  ;;  %v3887_v59 = vpack.c.bf16 %v1863_v17, %v1859_v51  ;;  %v2017_v39 = vld [vmem:[%s6087_s12 + $0x30] sm:$0xff]  ;;  %v2051_v46 = vld [vmem:[%s6087_s12 + $0x140] sm:$0xff] }
 0x365   :  { %v5617_v43 = vpack.c.bf16 %v2018_v40, %v2017_v39  ;;  %v5630_v49 = vpack.c.bf16 %v2052_v47, %v2051_v46  ;;  %v2019_v17 = vld [vmem:[%s6087_s12 + $0x40] sm:$0xff] }
 0x366   :  { %3853 = vmatpush3.bf16.msra.mxu1 %v3852_v3  ;;  %v1539_v16 = vsel %vm1529_vm13, %v1524_v11, %v1534_v15  ;;  %v3010_v3 = vld [vmem:[%s6088_s8] ss:$0 sm:$0xff] }
 0x367   :  { %3854 = vmatprep.subr.bf16.mxu1 %v4120_v42  ;;  %3872 = vmatpush1.bf16.msra.mxu0 %v3871_v50  ;;  %v2054_v50 = vld [vmem:[%s6087_s12 + $0x158] sm:$0xff] }
 0x368   :  { %3890 = vmatprep.subr.bf16.mxu0 %v5509_v61 }
 0x36a   :  { %3856 = vmatpush3.bf16.msra.mxu1 %v3855_v18 }
 0x36b   :  { %3874 = vmatprep.subr.bf16.mxu1 %v3873_v60  ;;  %v2030_v60 = vld [vmem:[%s6087_s12 + $0x98] sm:$0xff] }
 0x36c   :  { %v5543_v12 = vpack.c.bf16 %v2030_v60, %v2029_v57  ;;  %v2059_v57 = vld [vmem:[%s6087_s12 + $0x180] sm:$0xff] }
 0x36d   :  { %3433 = vmatmul.mubr.msk.f32.vlgmr.msra.gmra.mrb[14].mxu1 %vm607_vm7, %v1539_v16  ;;  %v2043_v16 = vld [vmem:[%s6087_s12 + $0x100] sm:$0xff] }
 0x36e   :  { %2004 = vmatprep.mubr.f32.mxu1 %v4122_v32  ;;  %3876 = vmatpush1.bf16.msra.mxu1 %v3875_v4  ;;  %v5533_v55 = vpack.c.bf16 %v2044_v29, %v2043_v16  ;;  %v5538_v4 = vpack.c.bf16 %v2012_v22, %v2011_v19  ;;  %v2058_v16 = vld [vmem:[%s6087_s12 + $0x178] sm:$0xff]  ;;  %v2039_v29 = vld [vmem:[%s6087_s12 + $0xe0] sm:$0xff]  ;;  %v2040_v19 = vld [vmem:[%s6087_s12 + $0xe8] sm:$0xff] }
 0x36f   :  { %3878 = vmatprep.subr.bf16.mxu1 %v3877_v30  ;;  %v5558_v30 = vpack.c.bf16 %v2046_v7, %v2045_v58  ;;  %v5699_v22 = vpack.c.bf16 %v2040_v19, %v2039_v29  ;;  %v2041_v7 = vld [vmem:[%s6087_s12 + $0xf0] sm:$0xff] }
 0x370   :  { %v5727_v20 = vpack.c.bf16 %v2042_v6, %v2041_v7 }
 0x372   :  { %3880 = vmatpush1.bf16.msra.mxu1 %v3879_v5  ;;  %v2015_v5 = vld [vmem:[%s6087_s12 + $0x20] sm:$0xff] }
 0x373   :  { %3882 = vmatprep.subr.bf16.mxu1 %v3881_v35  ;;  %v2049_v35 = vld [vmem:[%s6087_s12 + $0x130] sm:$0xff]  ;;  %v5592_v27 = vpack.c.bf16 %v2016_v34, %v2015_v5  ;;  %v5745_v5 = vpack.c.bf16 %v2062_v54, %v2061_v24 }
 0x374   :  { %v5614_v53 = vpack.c.bf16 %v2050_v37, %v2049_v35 }
 0x376   :  { %3884 = vmatpush1.bf16.msra.mxu1 %v3883_v41  ;;  %v2035_v41 = vld [vmem:[%s6087_s12 + $0xc0] sm:$0xff] }
 0x377   :  { %3886 = vmatprep.subr.bf16.mxu1 %v3885_v23  ;;  %v5627_v48 = vpack.c.bf16 %v2036_v52, %v2035_v41  ;;  %v2053_v23 = vld [vmem:[%s6087_s12 + $0x150] sm:$0xff] }
 0x378   :  { %v5642_v51 = vpack.c.bf16 %v2054_v50, %v2053_v23 }
 0x37a   :  { %3888 = vmatpush1.bf16.msra.mxu1 %v3887_v59  ;;  %v2020_v59 = vld [vmem:[%s6087_s12 + $0x48] sm:$0xff] }
 0x37b   :  { %3921 = vmatprep.subr.bf16.mxu1 %v4120_v42  ;;  %v5656_v2 = vpack.c.bf16 %v2020_v59, %v2019_v17 }
 0x426   :  { %v3253_v62 = vpop.f32.mrb[18].mxu0 }
 0x427   :  { %v3254_v1 = vpop.f32.mrb[19].mxu0 }
 0x428   :  { %v3255_v8 = vadd.f32 %v3254_v1, %v3253_v62  ;;  %v2056_v62 = vld [vmem:[%s6087_s12 + $0x168] sm:$0xff] }
 0x429   :  { %v5661_v1 = vpack.c.bf16 %v2056_v62, %v2055_v63 }
 0x434   :  { %v3218_v11 = vpop.f32.mrb[12].mxu1 }
 0x435   :  { %v3219_v13 = vpop.f32.mrb[13].mxu1 }
 0x436   :  { %v3220_v14 = vadd.f32 %v3219_v13, %v3218_v11  ;;  %v2038_v11 = vld [vmem:[%s6087_s12 + $0xd8] sm:$0xff]  ;;  %v2021_v13 = vld [vmem:[%s6087_s12 + $0x50] sm:$0xff] }
 0x438   :  { %v1687_v18 = vadd.f32 %v3220_v14, %v3010_v3  ;;  %v2022_v14 = vld [vmem:[%s6087_s12 + $0x58] sm:$0xff] }
 0x43a   :  { %v1757_v15 = vadd.f32 %v3255_v8, %v1687_v18  ;;  %v2037_v8 = vld [vmem:[%s6087_s12 + $0xd0] sm:$0xff] }
 0x43b   :  { %v5672_v3 = vpack.c.bf16 %v2038_v11, %v2037_v8  ;;  %v2057_v18 = vld [vmem:[%s6087_s12 + $0x170] sm:$0xff] }
 0x440   :  { %v1826_v21 = vpop.f32.mrb[14].mxu1 }
 0x441   :  { %v1827_v31 = vadd.f32 %v1826_v21, %v1757_v15  ;;  %v3434_v56 = vpop.f32.mrb[15].mxu1  ;;  %v5683_v15 = vpack.c.bf16 %v2022_v14, %v2021_v13  ;;  %v5689_v21 = vpack.c.bf16 %v2058_v16, %v2057_v18 }
 0x442   :  { %v2024_v56 = vld [vmem:[%s6087_s12 + $0x68] sm:$0xff] }
 0x443   :  { %vm1830_vm15 = vcmp.gt.f32.partialorder %v1827_v31, 0.0  ;;  %v1831_v0 = vmul.f32 0.2, %v1827_v31 }
 0x445   :  { %v1832_v9 = vsel %vm1830_vm15, %v1827_v31, %v1831_v0  ;;  %v2023_v31 = vld [vmem:[%s6087_s12 + $0x60] sm:$0xff]  ;;  %v2060_v0 = vld [vmem:[%s6087_s12 + $0x188] sm:$0xff] }
 0x446   :  { %3012 = vmatmul.mubr.msk.f32.vlgmr.msra.gmra.mrb[20].mxu0 %vm1865_vm14, %v1832_v9  ;;  %3013 = vmatmul.mubr.msk.f32.vlgmr.msra.gmra.mrb[16].mxu1 %vm1865_vm14, %v1832_v9  ;;  %v5711_v60 = vpack.c.bf16 %v2024_v56, %v2023_v31  ;;  %v5717_v58 = vpack.c.bf16 %v2060_v0, %v2059_v57  ;;  %v2025_v9 = vld [vmem:[%s6087_s12 + $0x70] sm:$0xff] }
 0x447   :  { %3923 = vmatpush1.bf16.msra.mxu1 %v5533_v55  ;;  %3892 = vmatpush3.bf16.msra.mxu0 %v5538_v4  ;;  %v5739_v28 = vpack.c.bf16 %v2026_v25, %v2025_v9 }
 0x448   :  { %3924 = vmatprep.subr.bf16.mxu1 %v4120_v42  ;;  %3894 = vmatprep.subr.bf16.mxu0 %v5543_v12 }
 0x44b   :  { %3926 = vmatpush1.bf16.msra.mxu1 %v5558_v30  ;;  %3896 = vmatpush3.bf16.msra.mxu0 %v5564_v44 }
 0x44c   :  { %3927 = vmatprep.subr.bf16.mxu1 %v4120_v42  ;;  %3898 = vmatprep.subr.bf16.mxu0 %v5571_v26 }
 0x44f   :  { %3929 = vmatpush1.bf16.msra.mxu1 %v5586_v10  ;;  %3900 = vmatpush3.bf16.msra.mxu0 %v5592_v27 }
 0x450   :  { %3930 = vmatprep.subr.bf16.mxu1 %v4120_v42  ;;  %3902 = vmatprep.subr.bf16.mxu0 %v5599_v38 }
 0x453   :  { %3932 = vmatpush1.bf16.msra.mxu1 %v5614_v53  ;;  %3904 = vmatpush3.bf16.msra.mxu0 %v5617_v43 }
 0x454   :  { %3933 = vmatprep.subr.bf16.mxu1 %v4120_v42  ;;  %3906 = vmatprep.subr.bf16.mxu0 %v5627_v48 }
 0x457   :  { %3935 = vmatpush1.bf16.msra.mxu1 %v5630_v49  ;;  %3908 = vmatpush3.bf16.msra.mxu0 %v5656_v2 }
 0x458   :  { %3936 = vmatprep.subr.bf16.mxu1 %v4120_v42  ;;  %3910 = vmatprep.subr.bf16.mxu0 %v5672_v3 }
 0x45b   :  { %3938 = vmatpush1.bf16.msra.mxu1 %v5642_v51  ;;  %3912 = vmatpush3.bf16.msra.mxu0 %v5683_v15 }
 0x45c   :  { %3939 = vmatprep.subr.bf16.mxu1 %v4120_v42  ;;  %3914 = vmatprep.subr.bf16.mxu0 %v5699_v22 }
 0x45f   :  { %3941 = vmatpush1.bf16.msra.mxu1 %v5661_v1  ;;  %3916 = vmatpush3.bf16.msra.mxu0 %v5711_v60 }
 0x460   :  { %3942 = vmatprep.subr.bf16.mxu1 %v4120_v42  ;;  %3918 = vmatprep.subr.bf16.mxu0 %v5727_v20 }
 0x463   :  { %3944 = vmatpush1.bf16.msra.mxu1 %v5689_v21  ;;  %3920 = vmatpush3.bf16.msra.mxu0 %v5739_v28 }
 0x464   :  { %3945 = vmatprep.subr.bf16.mxu1 %v4120_v42  ;;  %3952 = vmatprep.subr.bf16.mxu0 %v5509_v61 }
 0x467   :  { %3947 = vmatpush1.bf16.msra.mxu1 %v5717_v58 }
 0x468   :  { %3948 = vmatprep.subr.bf16.mxu1 %v4120_v42 }
 0x46b   :  { %3950 = vmatpush1.bf16.msra.mxu1 %v5745_v5 }
 0x46c   :  { %3983 = vmatprep.subr.bf16.mxu1 %v4120_v42 }
 0x519   :  { %v5751_v34 = vpop.f32.mrb[20].mxu0  ;;  %v5753_v45 = vpop.f32.mrb[16].mxu1 }
 0x51a   :  { %v2081_v33 = vsel %vm530_vm5, %v5751_v34, 0.0  ;;  %v2095_v35 = vsel %vm530_vm5, %v5753_v45, 0.0  ;;  %v5759_v37 = vpop.f32.mrb[21].mxu0  ;;  %v5761_v39 = vpop.f32.mrb[17].mxu1 }
 0x51b   :  { %v2082_v40 = vrot.slane %v2081_v33, 4  ;;  %v2096_v41 = vrot.slane %v2095_v35, 4  ;;  %v2088_v61 = vsel %vm530_vm5, %v5759_v37, 0.0  ;;  %v2111_v52 = vmul.f32 %v5759_v37, %v5759_v37 }
 0x51c   :  { %v2089_v46 = vrot.slane %v2088_v61, 4  ;;  %v2103_v47 = vsel %vm2102_vm0, %v5761_v39, 0.0  ;;  %v2113_v62 = vmul.f32 %v5761_v39, %v5761_v39 }
 0x51d   :  { %v2083_v23 = vadd.f32 %v2082_v40, %v2081_v33  ;;  %v2097_v50 = vadd.f32 %v2096_v41, %v2095_v35  ;;  %v2121_v59 = vsel %vm530_vm5, %v2111_v52, 0.0  ;;  %v2104_v63 = vrot.slane %v2103_v47, 4 }
 0x51e   :  { %v2090_v17 = vadd.f32 %v2089_v46, %v2088_v61  ;;  %v2122_v14 = vrot.slane %v2121_v59, 4  ;;  %v2135_v16 = vsel %vm2102_vm0, %v2113_v62, 0.0  ;;  %v2075_v62 = vld [vmem:[%s6089_s13 + $0x60] sm:$0xff] }
 0x51f   :  { %v2084_v8 = vrot.slane %v2083_v23, 2  ;;  %v2098_v11 = vrot.slane %v2097_v50, 2  ;;  %v2105_v18 = vadd.f32 %v2104_v63, %v2103_v47  ;;  %v2136_v57 = vrot.slane %v2135_v16, 4 }
 0x520   :  { %v2091_v13 = vrot.slane %v2090_v17, 2  ;;  %v2123_v31 = vadd.f32 %v2122_v14, %v2121_v59  ;;  %v2110_v59 = vmul.f32 %v5751_v34, %v5751_v34  ;;  %v2069_v14 = vld [vmem:[%s6089_s13 + $0x30] sm:$0xff] }
 0x521   :  { %v2085_v29 = vadd.f32 %v2084_v8, %v2083_v23  ;;  %v2099_v19 = vadd.f32 %v2098_v11, %v2097_v50  ;;  %v2106_v56 = vrot.slane %v2105_v18, 2  ;;  %v2137_v9 = vadd.f32 %v2136_v57, %v2135_v16  ;;  %v2066_v8 = vld [vmem:[%s6089_s13 + $0x18] sm:$0xff]  ;;  %v2073_v57 = vld [vmem:[%s6089_s13 + $0x50] sm:$0xff] }
 0x522   :  { %v2092_v0 = vadd.f32 %v2091_v13, %v2090_v17  ;;  %v2124_v24 = vrot.slane %v2123_v31, 2  ;;  %v2070_v11 = vld [vmem:[%s6089_s13 + $0x38] sm:$0xff]  ;;  %v2065_v13 = vld [vmem:[%s6089_s13 + $0x10] sm:$0xff] }
 0x523   :  { %v2086_v7 = vrot.slane %v2085_v29, 1  ;;  %v2107_v6 = vadd.f32 %v2106_v56, %v2105_v18  ;;  %v2100_v54 = vrot.slane %v2099_v19, 1  ;;  %v2138_v35 = vrot.slane %v2137_v9, 2 }
 0x524   :  { %v2093_v25 = vrot.slane %v2092_v0, 1  ;;  %v2125_v41 = vadd.f32 %v2124_v24, %v2123_v31  ;;  %v4021_v16 = vpack.c.bf16 %v2070_v11, %v2066_v8  ;;  %v2078_v31 = vld [vmem:[%s6089_s13 + $0x78] sm:$0xff]  ;;  %v2782_v8 = vld [vmem:[%s6091_s14 + $0x10] sm:$0xff] }
 0x525   :  { %v2108_v33 = vrot.slane %v2107_v6, 1  ;;  %v2087_v61 = vadd.f32 %v2086_v7, %v2085_v29  ;;  %v2139_v52 = vadd.f32 %v2138_v35, %v2137_v9  ;;  %v2101_v23 = vadd.f32 %v2100_v54, %v2099_v19  ;;  %v2074_v19 = vld [vmem:[%s6089_s13 + $0x58] sm:$0xff] }
 0x526   :  { %v2094_v40 = vadd.f32 %v2093_v25, %v2092_v0  ;;  %v2126_v47 = vrot.slane %v2125_v41, 1  ;;  %v4023_v29 = vpack.c.bf16 %v2069_v14, %v2065_v13  ;;  %v4025_v56 = vpack.c.bf16 %v2078_v31, %v2074_v19  ;;  %v2077_v0 = vld [vmem:[%s6089_s13 + $0x70] sm:$0xff]  ;;  %v2783_v11 = vld [vmem:[%s6091_s14 + $0x18] sm:$0xff]  ;;  %v2820_v13 = vld [vmem:[%s6091_s14 + $0x140] sm:$0xff] }
 0x527   :  { %v2109_v46 = vadd.f32 %v2108_v33, %v2107_v6  ;;  %v2140_v17 = vrot.slane %v2139_v52, 1  ;;  %v4027_v7 = vpack.c.bf16 %v2077_v0, %v2073_v57  ;;  %v2821_v14 = vld [vmem:[%s6091_s14 + $0x148] sm:$0xff]  ;;  %v2823_v19 = vld [vmem:[%s6091_s14 + $0x158] sm:$0xff] }
 0x528   :  { %2209 = vmatprep.mubr.f32.mxu0 %v2094_v40  ;;  %v2127_v50 = vadd.f32 %v2126_v47, %v2125_v41  ;;  %v2801_v57 = vld [vmem:[%s6091_s14 + $0xa8] sm:$0xff] }
 0x529   :  { %2210 = vmatmul.mubr.f32.vlgmr.msra.gmra.mrb[22].mxu0 %v2087_v61  ;;  %3014 = vmatprep.mubr.msk.f32.mxu1 %vm1044_vm8, %v2109_v46  ;;  %v2141_v63 = vadd.f32 %v2140_v17, %v2139_v52 }
 0x52a   :  { %3954 = vmatpush3.bf16.msra.mxu0 %v5538_v4  ;;  %2280 = vmatmul.mubr.f32.vlgmr.msra.gmra.mrb[18].mxu1 %v2101_v23  ;;  %v2114_v4 = vsel %vm530_vm5, %v2110_v59, 0.0 }
 0x52b   :  { %3956 = vmatprep.subr.bf16.mxu0 %v5543_v12  ;;  %3985 = vmatpush1.bf16.msra.mxu1 %v5533_v55  ;;  %v2115_v12 = vrot.slane %v2114_v4, 4  ;;  %v2112_v55 = vmul.f32 %v5753_v45, %v5753_v45 }
 0x52c   :  { %2352 = vmatprep.mubr.f32.mxu0 %v2127_v50  ;;  %3986 = vmatprep.subr.bf16.mxu1 %v4120_v42 }
 0x52d   :  { %3015 = vmatprep.mubr.msk.f32.mxu1 %vm1044_vm8, %v2141_v63 }
 0x52e   :  { %3958 = vmatpush3.bf16.msra.mxu0 %v5564_v44  ;;  %v2116_v44 = vadd.f32 %v2115_v12, %v2114_v4  ;;  %v2079_v4 = vld [vmem:[%s6090_s10] sm:$0x1] }
 0x52f   :  { %3960 = vmatprep.subr.bf16.mxu0 %v5571_v26  ;;  %3988 = vmatpush1.bf16.msra.mxu1 %v5558_v30  ;;  %v2128_v30 = vsel %vm530_vm5, %v2112_v55, 0.0  ;;  %vm2987_vm5 = vcmask 1024  }
 0x530   :  { %3989 = vmatprep.subr.bf16.mxu1 %v4120_v42  ;;  %v2117_v26 = vrot.slane %v2116_v44, 2 }
 0x532   :  { %3962 = vmatpush3.bf16.msra.mxu0 %v5592_v27  ;;  %v2118_v27 = vadd.f32 %v2117_v26, %v2116_v44  ;;  %v2812_v44 = vld [vmem:[%s6091_s14 + $0x100] sm:$0xff] }
 0x533   :  { %3964 = vmatprep.subr.bf16.mxu0 %v5599_v38  ;;  %3991 = vmatpush1.bf16.msra.mxu1 %v5586_v10  ;;  %v2129_v10 = vrot.slane %v2128_v30, 4  ;;  %v2080_v26 = vld [vmem:[%s6092_s11] sm:$0x1] }
 0x534   :  { %3992 = vmatprep.subr.bf16.mxu1 %v4120_v42 }
 0x535   :  { %v2130_v38 = vadd.f32 %v2129_v10, %v2128_v30  ;;  %v2813_v30 = vld [vmem:[%s6091_s14 + $0x108] sm:$0xff] }
 0x536   :  { %3966 = vmatpush3.bf16.msra.mxu0 %v5617_v43 }
 0x537   :  { %3968 = vmatprep.subr.bf16.mxu0 %v5627_v48  ;;  %3994 = vmatpush1.bf16.msra.mxu1 %v5614_v53  ;;  %v2119_v53 = vrot.slane %v2118_v27, 1  ;;  %v2131_v43 = vrot.slane %v2130_v38, 2 }
 0x538   :  { %3995 = vmatprep.subr.bf16.mxu1 %v4120_v42 }
 0x539   :  { %v2120_v48 = vadd.f32 %v2119_v53, %v2118_v27  ;;  %v4078_v27 = vpack.c.bf16 %v2813_v30, %v2812_v44  ;;  %v2814_v53 = vld [vmem:[%s6091_s14 + $0x110] sm:$0xff]  ;;  %v2829_v44 = vld [vmem:[%s6091_s14 + $0x188] sm:$0xff] }
 0x53a   :  { %3970 = vmatpush3.bf16.msra.mxu0 %v5656_v2 }
 0x53b   :  { %3972 = vmatprep.subr.bf16.mxu0 %v5672_v3  ;;  %3997 = vmatpush1.bf16.msra.mxu1 %v5630_v49  ;;  %v2132_v49 = vadd.f32 %v2131_v43, %v2130_v38  ;;  %v2068_v3 = vld [vmem:[%s6089_s13 + $0x28] sm:$0xff]  ;;  %v2815_v43 = vld [vmem:[%s6091_s14 + $0x118] sm:$0xff] }
 0x53c   :  { %3998 = vmatprep.subr.bf16.mxu1 %v4120_v42 }
 0x53e   :  { %3974 = vmatpush3.bf16.msra.mxu0 %v5683_v15  ;;  %v2063_v15 = vld [vmem:[%s6089_s13] sm:$0xff] }
 0x53f   :  { %3976 = vmatprep.subr.bf16.mxu0 %v5699_v22  ;;  %4000 = vmatpush1.bf16.msra.mxu1 %v5642_v51  ;;  %v2133_v51 = vrot.slane %v2132_v49, 1  ;;  %v2067_v22 = vld [vmem:[%s6089_s13 + $0x20] sm:$0xff] }
 0x540   :  { %4001 = vmatprep.subr.bf16.mxu1 %v4120_v42 }
 0x541   :  { %v2134_v2 = vadd.f32 %v2133_v51, %v2132_v49  ;;  %v2816_v49 = vld [vmem:[%s6091_s14 + $0x120] sm:$0xff]  ;;  %v2817_v51 = vld [vmem:[%s6091_s14 + $0x128] sm:$0xff] }
 0x542   :  { %3978 = vmatpush3.bf16.msra.mxu0 %v5711_v60  ;;  %v2072_v60 = vld [vmem:[%s6089_s13 + $0x48] sm:$0xff] }
 0x543   :  { %3980 = vmatprep.subr.bf16.mxu0 %v5727_v20  ;;  %4003 = vmatpush1.bf16.msra.mxu1 %v5661_v1  ;;  %v2064_v1 = vld [vmem:[%s6089_s13 + $0x8] sm:$0xff]  ;;  %v5837_v20 = vpack.c.bf16 %v2067_v22, %v2063_v15  ;;  %v2818_v15 = vld [vmem:[%s6091_s14 + $0x130] sm:$0xff]  ;;  %v2780_v22 = vld [vmem:[%s6091_s14] sm:$0xff] }
 0x544   :  { %4004 = vmatprep.subr.bf16.mxu1 %v4120_v42 }
 0x546   :  { %3982 = vmatpush3.bf16.msra.mxu0 %v5739_v28 }
 0x547   :  { %4006 = vmatpush1.bf16.msra.mxu1 %v5689_v21  ;;  %v5826_v21 = vpack.c.bf16 %v2068_v3, %v2064_v1  ;;  %v2797_v1 = vld [vmem:[%s6091_s14 + $0x88] sm:$0xff]  ;;  %v4084_v3 = vpack.c.bf16 %v2817_v51, %v2816_v49  ;;  %v2831_v49 = vld [vmem:[%s6091_s14 + $0x198] sm:$0xff] }
 0x548   :  { %4007 = vmatprep.subr.bf16.mxu1 %v4120_v42 }
 0x549   :  { %2353 = vmatmul.mubr.f32.vlgmr.msra.gmra.mrb[24].mxu0 %v2120_v48  ;;  %4014 = vmatprep.subr.bf16.mxu0 %v5826_v21  ;;  %v4081_v48 = vpack.c.bf16 %v2815_v43, %v2814_v53  ;;  %v2791_v53 = vld [vmem:[%s6091_s14 + $0x58] sm:$0xff] }
 0x54a   :  { %2505 = vmatprep.mubr.f32.mxu0 %v4122_v32  ;;  %4016 = vmatpush1.bf16.msra.mxu0 %v5837_v20 }
 0x54b   :  { %4009 = vmatpush1.bf16.msra.mxu1 %v5717_v58  ;;  %v2076_v58 = vld [vmem:[%s6089_s13 + $0x68] sm:$0xff] }
 0x54c   :  { %4010 = vmatprep.subr.bf16.mxu1 %v4120_v42  ;;  %v5839_v28 = vpack.c.bf16 %v2076_v58, %v2072_v60  ;;  %v2781_v60 = vld [vmem:[%s6091_s14 + $0x8] sm:$0xff]  ;;  %v2798_v58 = vld [vmem:[%s6091_s14 + $0x90] sm:$0xff] }
 0x54e   :  { %4018 = vmatprep.subr.bf16.mxu0 %v5839_v28 }
 0x54f   :  { %4012 = vmatpush1.bf16.msra.mxu1 %v5745_v5  ;;  %v2071_v5 = vld [vmem:[%s6089_s13 + $0x40] sm:$0xff] }
 0x550   :  { %v5861_v18 = vpack.c.bf16 %v2075_v62, %v2071_v5  ;;  %4038 = vmatprep.subr.bf16.mxu1 %v4021_v16 }
 0x552   :  { %2423 = vmatmul.mubr.f32.vlgmr.msra.gmra.mrb[20].mxu1 %v2134_v2  ;;  %4020 = vmatpush1.bf16.msra.mxu0 %v5861_v18  ;;  %v2796_v2 = vld [vmem:[%s6091_s14 + $0x80] sm:$0xff] }
 0x553   :  { %2721 = vmatprep.mubr.f32.mxu1 %v4122_v32  ;;  %4040 = vmatpush1.bf16.msra.mxu1 %v4023_v29 }
 0x554   :  { %4022 = vmatprep.subr.bf16.mxu0 %v4021_v16  ;;  %4042 = vmatprep.subr.bf16.mxu1 %v4025_v56  ;;  %v4090_v16 = vpack.c.bf16 %v2821_v14, %v2820_v13 }
 0x557   :  { %4044 = vmatpush1.bf16.msra.mxu1 %v4027_v7 }
 0x558   :  { %4077 = vmatprep.subr.bf16.mxu1 %v4120_v42 }
 0x5fc   :  { %v3295_v6 = vpop.f32.mrb[22].mxu0 }
 0x5fd   :  { %v3296_v9 = vpop.f32.mrb[23].mxu0  ;;  %v2281_v25 = vpop.f32.mrb[18].mxu1 }
 0x5fe   :  { %v3297_v24 = vadd.f32 %v3296_v9, %v3295_v6  ;;  %v2283_v54 = vpop.f32.mrb[19].mxu1  ;;  %v2785_v6 = vld [vmem:[%s6091_s14 + $0x28] sm:$0xff] }
 0x600   :  { %v2282_v33 = vadd.f32 %v3297_v24, %v2281_v25  ;;  %v2824_v25 = vld [vmem:[%s6091_s14 + $0x160] sm:$0xff]  ;;  %v2825_v24 = vld [vmem:[%s6091_s14 + $0x168] sm:$0xff] }
 0x601   :  { %v4096_v54 = vpack.c.bf16 %v2825_v24, %v2824_v25 }
 0x602   :  { %v2428_v61 = vmul.f32 0.03846154, %v2282_v33  ;;  %v2802_v33 = vld [vmem:[%s6091_s14 + $0xb0] sm:$0xff] }
 0x604   :  { %v2430_v50 = vmul.f32 %v2428_v61, %v2428_v61 }
 0x61c   :  { %v3330_v35 = vpop.f32.mrb[24].mxu0 }
 0x61d   :  { %v3331_v40 = vpop.f32.mrb[25].mxu0 }
 0x61e   :  { %v3332_v41 = vadd.f32 %v3331_v40, %v3330_v35  ;;  %v2803_v35 = vld [vmem:[%s6091_s14 + $0xb8] sm:$0xff] }
 0x61f   :  { %v4057_v40 = vpack.c.bf16 %v2803_v35, %v2802_v33 }
 0x625   :  { %v2424_v52 = vpop.f32.mrb[20].mxu1 }
 0x626   :  { %v2425_v46 = vadd.f32 %v3332_v41, %v2424_v52  ;;  %v2426_v47 = vpop.f32.mrb[21].mxu1  ;;  %v2786_v41 = vld [vmem:[%s6091_s14 + $0x30] sm:$0xff] }
 0x627   :  { %v2827_v47 = vld [vmem:[%s6091_s14 + $0x178] sm:$0xff] }
 0x628   :  { %v2429_v23 = vmul.f32 0.03846154, %v2425_v46  ;;  %v2826_v46 = vld [vmem:[%s6091_s14 + $0x170] sm:$0xff] }
 0x62a   :  { %v2431_v17 = vsub.f32 %v2429_v23, %v2430_v50  ;;  %v4099_v23 = vpack.c.bf16 %v2827_v47, %v2826_v46  ;;  %v2804_v50 = vld [vmem:[%s6091_s14 + $0xc0] sm:$0xff] }
 0x62c   :  { %v2432_v59 = vmax.f32 %v2431_v17, 0.0  ;;  %v2805_v17 = vld [vmem:[%s6091_s14 + $0xc8] sm:$0xff] }
 0x62e   :  { %v2433_v63 = vadd.f32 1e-05, %v2432_v59  ;;  %v4061_v59 = vpack.c.bf16 %v2805_v17, %v2804_v50 }
 0x630   :  { %4113 = vrsqrt.f32 %v2433_v63  ;;  %v2788_v63 = vld [vmem:[%s6091_s14 + $0x40] sm:$0xff] }
 0x63a   :  { %v4114_v12 = vpop.eup %4113 }
 0x63b   :  { %v2435_v55 = vmul.f32 %v4114_v12, %v2079_v4  ;;  %v2789_v4 = vld [vmem:[%s6091_s14 + $0x48] sm:$0xff] }
 0x63c   :  { %v4063_v12 = vpack.c.bf16 %v2789_v4, %v2788_v63 }
 0x63d   :  { %3016 = vmatmul.mubr.msk.f32.vlgmr.msra.gmra.mrb[26].mxu0 %vm1044_vm8, %v2435_v55  ;;  %v2436_v10 = vmul.f32 %v2435_v55, %v2428_v61  ;;  %v2787_v61 = vld [vmem:[%s6091_s14 + $0x38] sm:$0xff] }
 0x63e   :  { %4024 = vmatpush1.bf16.msra.mxu0 %v4023_v29  ;;  %2576 = vmatprep.mubr.f32.mxu0 %v4122_v32  ;;  %v2822_v29 = vld [vmem:[%s6091_s14 + $0x150] sm:$0xff]  ;;  %v4059_v52 = vpack.c.bf16 %v2787_v61, %v2786_v41 }
 0x63f   :  { %4026 = vmatprep.subr.bf16.mxu0 %v4025_v56  ;;  %v2437_v38 = vsub.f32 %v2080_v26, %v2436_v10  ;;  %v4093_v31 = vpack.c.bf16 %v2823_v19, %v2822_v29  ;;  %v2800_v56 = vld [vmem:[%s6091_s14 + $0xa0] sm:$0xff]  ;;  %v2806_v26 = vld [vmem:[%s6091_s14 + $0xd0] sm:$0xff]  ;;  %v2807_v10 = vld [vmem:[%s6091_s14 + $0xd8] sm:$0xff] }
 0x640   :  { %v4053_v0 = vpack.c.bf16 %v2801_v57, %v2800_v56 }
 0x641   :  { %3019 = vmatmul.mubr.msk.f32.vlgmr.msra.gmra.mrb[22].mxu1 %vm1044_vm8, %v2437_v38 }
 0x642   :  { %4028 = vmatpush1.bf16.msra.mxu0 %v4027_v7  ;;  %4079 = vmatpush1.bf16.msra.mxu1 %v4078_v27  ;;  %v2784_v7 = vld [vmem:[%s6091_s14 + $0x20] sm:$0xff]  ;;  %v4065_v27 = vpack.c.bf16 %v2807_v10, %v2806_v26 }
 0x643   :  { %4030 = vmatprep.subr.bf16.mxu0 %v5826_v21  ;;  %4080 = vmatprep.subr.bf16.mxu1 %v4120_v42  ;;  %v4045_v21 = vpack.c.bf16 %v2797_v1, %v2796_v2  ;;  %v4055_v9 = vpack.c.bf16 %v2785_v6, %v2784_v7  ;;  %v2808_v2 = vld [vmem:[%s6091_s14 + $0xe0] sm:$0xff]  ;;  %v2809_v1 = vld [vmem:[%s6091_s14 + $0xe8] sm:$0xff] }
 0x645   :  { %3017 = vmatmul.mubr.msk.f32.vlgmr.msra.gmra.mrb[28].mxu0 %vm1044_vm8, %v2435_v55  ;;  %v2828_v55 = vld [vmem:[%s6091_s14 + $0x180] sm:$0xff] }
 0x646   :  { %4032 = vmatpush1.bf16.msra.mxu0 %v5837_v20  ;;  %2650 = vmatprep.mubr.f32.mxu0 %v4122_v32  ;;  %v2819_v32 = vld [vmem:[%s6091_s14 + $0x138] sm:$0xff]  ;;  %v4102_v30 = vpack.c.bf16 %v2829_v44, %v2828_v55 }
 0x647   :  { %4034 = vmatprep.subr.bf16.mxu0 %v5839_v28  ;;  %4082 = vmatpush1.bf16.msra.mxu1 %v4081_v48  ;;  %v2799_v20 = vld [vmem:[%s6091_s14 + $0x98] sm:$0xff]  ;;  %v4047_v28 = vpack.c.bf16 %v2781_v60, %v2780_v22  ;;  %v4087_v5 = vpack.c.bf16 %v2819_v32, %v2818_v15  ;;  %v2830_v48 = vld [vmem:[%s6091_s14 + $0x190] sm:$0xff]  ;;  %v2793_v15 = vld [vmem:[%s6091_s14 + $0x68] sm:$0xff] }
 0x648   :  { %4083 = vmatprep.subr.bf16.mxu1 %v4120_v42  ;;  %v4049_v62 = vpack.c.bf16 %v2799_v20, %v2798_v58  ;;  %v4105_v51 = vpack.c.bf16 %v2831_v49, %v2830_v48  ;;  %v2810_v22 = vld [vmem:[%s6091_s14 + $0xf0] sm:$0xff]  ;;  %v2811_v60 = vld [vmem:[%s6091_s14 + $0xf8] sm:$0xff] }
 0x649   :  { %v4073_v32 = vpack.c.bf16 %v2811_v60, %v2810_v22  ;;  %v2794_v58 = vld [vmem:[%s6091_s14 + $0x70] sm:$0xff]  ;;  %v2795_v20 = vld [vmem:[%s6091_s14 + $0x78] sm:$0xff] }
 0x64a   :  { %4036 = vmatpush1.bf16.msra.mxu0 %v5861_v18  ;;  %v4051_v18 = vpack.c.bf16 %v2783_v11, %v2782_v8 }
 0x64b   :  { %4085 = vmatpush1.bf16.msra.mxu1 %v4084_v3  ;;  %4046 = vmatprep.subr.bf16.mxu0 %v4045_v21  ;;  %v4069_v3 = vpack.c.bf16 %v2809_v1, %v2808_v2 }
 0x64c   :  { %4086 = vmatprep.subr.bf16.mxu1 %v4120_v42 }
 0x64d   :  { %3018 = vmatmul.mubr.msk.f32.vlgmr.msra.gmra.mrb[30].mxu0 %vm1044_vm8, %v2437_v38  ;;  %v2790_v38 = vld [vmem:[%s6091_s14 + $0x50] sm:$0xff] }
 0x64e   :  { %4048 = vmatpush3.bf16.msra.mxu0 %v4047_v28  ;;  %v4067_v43 = vpack.c.bf16 %v2791_v53, %v2790_v38  ;;  %v4075_v28 = vpack.c.bf16 %v2795_v20, %v2794_v58 }
 0x64f   :  { %4088 = vmatpush1.bf16.msra.mxu1 %v4087_v5  ;;  %4050 = vmatprep.subr.bf16.mxu0 %v4049_v62 }
 0x650   :  { %4089 = vmatprep.subr.bf16.mxu1 %v4120_v42 }
 0x652   :  { %4052 = vmatpush3.bf16.msra.mxu0 %v4051_v18 }
 0x653   :  { %4091 = vmatpush1.bf16.msra.mxu1 %v4090_v16  ;;  %4054 = vmatprep.subr.bf16.mxu0 %v4053_v0 }
 0x654   :  { %4092 = vmatprep.subr.bf16.mxu1 %v4120_v42 }
 0x656   :  { %4056 = vmatpush3.bf16.msra.mxu0 %v4055_v9 }
 0x657   :  { %4094 = vmatpush1.bf16.msra.mxu1 %v4093_v31  ;;  %4058 = vmatprep.subr.bf16.mxu0 %v4057_v40 }
 0x658   :  { %4095 = vmatprep.subr.bf16.mxu1 %v4120_v42 }
 0x65a   :  { %4060 = vmatpush3.bf16.msra.mxu0 %v4059_v52 }
 0x65b   :  { %4097 = vmatpush1.bf16.msra.mxu1 %v4096_v54  ;;  %4062 = vmatprep.subr.bf16.mxu0 %v4061_v59 }
 0x65c   :  { %4098 = vmatprep.subr.bf16.mxu1 %v4120_v42 }
 0x65e   :  { %4064 = vmatpush3.bf16.msra.mxu0 %v4063_v12 }
 0x65f   :  { %4100 = vmatpush1.bf16.msra.mxu1 %v4099_v23  ;;  %4066 = vmatprep.subr.bf16.mxu0 %v4065_v27  ;;  %v21_v23 = vstv %s6093_s15 }
 0x660   :  { %4101 = vmatprep.subr.bf16.mxu1 %v4120_v42  ;;  %22 = vst [vmem:[#allocation2] sm:$0x1] %v21_v23 }
 0x662   :  { %4068 = vmatpush3.bf16.msra.mxu0 %v4067_v43 }
 0x663   :  { %4103 = vmatpush1.bf16.msra.mxu1 %v4102_v30  ;;  %4070 = vmatprep.subr.bf16.mxu0 %v4069_v3 }
 0x664   :  { %4104 = vmatprep.subr.bf16.mxu1 %v4120_v42  ;;  %v2792_v42 = vld [vmem:[%s6091_s14 + $0x60] sm:$0xff] }
 0x665   :  { %v4071_v21 = vpack.c.bf16 %v2793_v15, %v2792_v42 }
 0x667   :  { %4106 = vmatpush1.bf16.msra.mxu1 %v4105_v51  ;;  %4072 = vmatpush3.bf16.msra.mxu0 %v4071_v21  ;;  %v3020_v59 = vld [vmem:[#allocation2] ss:$0 sm:$0xff] }
 0x668   :  { %4074 = vmatprep.subr.bf16.mxu0 %v4073_v32 }
 0x66b   :  { %4076 = vmatpush3.bf16.msra.mxu0 %v4075_v28 }
 0x710   :  { %v2507_v5 = vpop.f32.mrb[26].mxu0 }
 0x711   :  { %v2731_v62 = vrot.slane %v2507_v5, %v5364_v36  ;;  %v2509_v8 = vpop.f32.mrb[27].mxu0 }
 0x712   :  { %v2735_v11 = vrot.slane %v2509_v8, %v5364_v36 }
 0x713   :  { %v2744_v13 = vmul.f32 %v2731_v62, %v5751_v34 }
 0x714   :  { %v2745_v14 = vmul.f32 %v2735_v11, %v5759_v37  ;;  %v2723_v18 = vpop.f32.mrb[22].mxu1 }
 0x715   :  { %v2725_v16 = vpop.f32.mrb[23].mxu1  ;;  %v2759_v57 = vrot.slane %v2723_v18, %v5364_v36 }
 0x716   :  { %v2763_v7 = vrot.slane %v2725_v16, %v5364_v36 }
 0x718   :  { %v2578_v29 = vpop.f32.mrb[28].mxu0 }
 0x719   :  { %v2739_v19 = vrot.slane %v2578_v29, %v5364_v36  ;;  %v2580_v31 = vpop.f32.mrb[29].mxu0 }
 0x71a   :  { %v2743_v56 = vrot.slane %v2580_v31, %v5364_v36 }
 0x71b   :  { %v2746_v0 = vmul.f32 %v2739_v19, %v5753_v45 }
 0x71c   :  { %v2747_v6 = vmul.f32 %v2743_v56, %v5761_v39 }
 0x71d   :  { %v2766_v9 = vadd.f32 %v2759_v57, %v2746_v0 }
 0x71e   :  { %v2767_v34 = vadd.f32 %v2763_v7, %v2747_v6 }
 0x71f   :  { %v2774_v25 = vmul.f32 0.2, %v2766_v9  ;;  %vm2770_vm2 = vcmp.gt.f32.partialorder %v2766_v9, 0.0 }
 0x720   :  { %v2652_v37 = vpop.f32.mrb[30].mxu0  ;;  %vm2771_vm1 = vcmp.gt.f32.partialorder %v2767_v34, 0.0  ;;  %v2775_v24 = vmul.f32 0.2, %v2767_v34 }
 0x721   :  { %v2751_v54 = vrot.slane %v2652_v37, %v5364_v36  ;;  %v2654_v33 = vpop.f32.mrb[31].mxu0  ;;  %v2778_v45 = vsel %vm2770_vm2, %v2766_v9, %v2774_v25 }
 0x722   :  { %v2755_v35 = vrot.slane %v2654_v33, %v5364_v36  ;;  %v2779_v40 = vsel %vm2771_vm1, %v2767_v34, %v2775_v24 }
 0x723   :  { %v2764_v41 = vadd.f32 %v2751_v54, %v2744_v13  ;;  %3021 = vmatprep.mubr.msk.f32.mxu1 %vm1044_vm8, %v2779_v40 }
 0x724   :  { %v2765_v61 = vadd.f32 %v2755_v35, %v2745_v14  ;;  %2977 = vmatmul.mubr.f32.vlgmr.msra.gmra.mrb[24].mxu1 %v2778_v45 }
 0x725   :  { %v2772_v39 = vmul.f32 0.2, %v2764_v41  ;;  %vm2768_vm4 = vcmp.gt.f32.partialorder %v2764_v41, 0.0 }
 0x726   :  { %vm2769_vm3 = vcmp.gt.f32.partialorder %v2765_v61, 0.0  ;;  %v2773_v52 = vmul.f32 0.2, %v2765_v61 }
 0x727   :  { %v2776_v47 = vsel %vm2768_vm4, %v2764_v41, %v2772_v39 }
 0x728   :  { %v2777_v46 = vsel %vm2769_vm3, %v2765_v61, %v2773_v52 }
 0x729   :  { %2906 = vmatprep.mubr.f32.mxu0 %v2777_v46 }
 0x72a   :  { %2907 = vmatmul.mubr.f32.vlgmr.msra.gmra.mrb[32].mxu0 %v2776_v47 }
 0x7f7   :  { %v2978_v36 = vpop.f32.mrb[24].mxu1 }
 0x7f8   :  { %v2980_v50 = vpop.f32.mrb[25].mxu1 }
 0x7fd   :  { %v3365_v17 = vpop.f32.mrb[32].mxu0 }
 0x7fe   :  { %v3366_v63 = vpop.f32.mrb[33].mxu0 }
 0x7ff   :  { %v3367_v4 = vadd.f32 %v3366_v63, %v3365_v17 }
 0x801   :  { %v2909_v12 = vadd.f32 %v3367_v4, %v3020_v59 }
 0x803   :  { %v2979_v55 = vadd.f32 %v2978_v36, %v2909_v12 }
 0x805   :  { %v2982_v44 = vsub.f32 0.0, %v2979_v55 }
 0x807   :  { %v2983_v30 = vmul.f32 1.442695, %v2982_v44 }
 0x809   :  { %4115 = vpow2.f32 %v2983_v30 }
 0x813   :  { %v4116_v26 = vpop.eup %4115 }
 0x814   :  { %v2985_v10 = vadd.f32 1.0, %v4116_v26 }
 0x816   :  { %4117 = vrcp.f32 %v2985_v10 }
 0x820   :  { %v4118_v27 = vpop.eup %4117 }
 0x821   :  { %2988 = vst.msk [vmem:[%s6094_s16] sm:$0x3] %vm2987_vm5, %v4118_v27 }

</bundles_post_ra>
